<compile_context>
chip_gen: v7x
topology: tpu7x:2x2x1
jax: 0.10.0
libtpu: 0.0.40
codegen_flags: <defaults>
</compile_context>

<pallas_src>
import numpy as np
import jax
import jax.numpy as jnp
from jax.experimental import pallas as pl
from jax.experimental.pallas import tpu as pltpu

HIDDEN = 128     # hidden_dim (kept small but lane-aligned; PyTorch script used 512)
VOCAB = 16       # Embedding input_size
SEQ = 8          # number of source tokens fused into one kernel call
NUM_LAYERS = 1   # tensor_dim = num_layers (unidirectional)


def positional_encoding(mb, seq_len, dim):
    """Faithful port of PositionalEncoding.forward's numpy construction."""
    pe = np.zeros([mb, seq_len, dim], dtype=np.float32)
    position_index = np.arange(seq_len).repeat(dim).reshape(-1, dim)
    dimension_index = np.tile(np.arange(dim), [seq_len, 1])
    pe[:, :, 0::2] = np.sin(
        position_index[:, 0::2] / 10000 ** (2 * dimension_index[:, 0::2] / dim))
    pe[:, :, 1::2] = np.cos(
        position_index[:, 1::2] / 10000 ** (2 * dimension_index[:, 1::2] / dim))
    return jnp.asarray(pe)


def gru_encoder_seq_kernel(x_emb_ref, h0_ref, wih_ref, whh_ref,
                           bih_ref, bhh_ref, out_ref):
    """S fused single-token Encoder.forward steps (PE already folded into b_ih).

    x_emb_ref : (S, H)  bf16  embedded source tokens (each at PE position 0)
    h0_ref    : (1, H)  f32   initial GRU hidden state
    wih_ref   : (H, 3H) bf16  W_ih^T, gate order [r | z | n] (torch.nn.GRU)
    whh_ref   : (H, 3H) bf16  W_hh^T
    bih_ref   : (1, 3H) f32   b_ih + pe0 @ W_ih^T  (positional encoding folded in)
    bhh_ref   : (1, 3H) f32   b_hh
    out_ref   : (S, H)  f32   h_t for every step; row S-1 is the final hidden
    """
    H = HIDDEN
    S = out_ref.shape[0]

    # Input-side matmul for all S tokens in one MXU-shaped dot, f32 accumulation.
    gi = jnp.dot(x_emb_ref[...], wih_ref[...],
                 preferred_element_type=jnp.float32) + bih_ref[...]

    whh = whh_ref[...]
    bhh = bhh_ref[...]
    h = h0_ref[...]                                    # (1, H) f32

    hs = []
    for t in range(S):                                 # static unroll (S small)
        gh = jnp.dot(h.astype(jnp.bfloat16), whh,
                     preferred_element_type=jnp.float32) + bhh
        gi_t = gi[t:t + 1, :]
        r = jax.nn.sigmoid(gi_t[:, 0:H] + gh[:, 0:H])
        z = jax.nn.sigmoid(gi_t[:, H:2 * H] + gh[:, H:2 * H])
        n = jnp.tanh(gi_t[:, 2 * H:3 * H] + r * gh[:, 2 * H:3 * H])
        h = (1.0 - z) * n + z * h                      # torch.nn.GRU update
        hs.append(h)

    # One sublane/lane-dense (S, H) store instead of per-step masked stores.
    out_ref[...] = jnp.concatenate(hs, axis=0)


def prepare_params(params):
    """Host-side prep: fold PE(pos 0) into b_ih, cast weights to bf16."""
    pe0 = positional_encoding(1, 1, HIDDEN).reshape(1, HIDDEN)        # = [0,1,0,1,...]
    b_ih_eff = params["b_ih"] + pe0 @ params["w_ih_t"]                # (1, 3H) f32
    return {
        "embedding": params["embedding"],
        "w_ih_t_bf16": params["w_ih_t"].astype(jnp.bfloat16),
        "w_hh_t_bf16": params["w_hh_t"].astype(jnp.bfloat16),
        "b_ih_eff": b_ih_eff.astype(jnp.float32),
        "b_hh": params["b_hh"].astype(jnp.float32),
    }


def encoder_forward_sequence(src_tokens, hidden0, prep):
    """Fuses S consecutive Encoder.forward(token, hidden, memory) calls
    (exactly how the seq2seq training loop drives the encoder) into one kernel.

    Returns (outputs, hidden) with outputs[t] == GRU output of step t,
    hidden == final hidden state — identical semantics to looping the module.
    """
    S = src_tokens.shape[0]
    # x = self.embedding(x) for every token (gather stays in XLA; bf16 for MXU).
    x_emb = jnp.take(prep["embedding"], src_tokens, axis=0).astype(jnp.bfloat16)
    h0 = hidden0.reshape(1, HIDDEN).astype(jnp.float32)

    vmem = pl.BlockSpec(memory_space=pltpu.MemorySpace.VMEM)   # whole array in VMEM
    out = pl.pallas_call(
        gru_encoder_seq_kernel,
        out_shape=jax.ShapeDtypeStruct((S, HIDDEN), jnp.float32),
        in_specs=[vmem] * 6,
        out_specs=vmem,
    )(x_emb, h0,
      prep["w_ih_t_bf16"], prep["w_hh_t_bf16"],
      prep["b_ih_eff"], prep["b_hh"])

    outputs = out.reshape(S, 1, HIDDEN)                    # per-step GRU outputs
    hidden = out[S - 1].reshape(NUM_LAYERS, 1, HIDDEN)     # final hidden state
    return outputs, hidden


def encoder_forward(x_idx, hidden, memory_idx, prep):
    """Mirrors Encoder.forward(x, hidden, memory) for a single token.

    With the default config the attention stack is empty, so `memory` is dead.
    """
    del memory_idx  # TODO(synk): plumb memory into the attention/FFN stack if enabled.
    tokens = jnp.reshape(x_idx, (1,)).astype(jnp.int32)
    outs, hid = encoder_forward_sequence(tokens, hidden, prep)
    return outs.reshape(1, 1, HIDDEN), hid                 # x: (1,1,H), hidden: (L,1,H)


def _reference_encoder_sequence(src_tokens, hidden0, prep):
    """Pure-JAX reference with identical dtype handling (correctness check)."""
    H = HIDDEN
    x_emb = jnp.take(prep["embedding"], src_tokens, axis=0).astype(jnp.bfloat16)
    gi = jnp.dot(x_emb, prep["w_ih_t_bf16"],
                 preferred_element_type=jnp.float32) + prep["b_ih_eff"]
    h = hidden0.reshape(1, H).astype(jnp.float32)
    outs = []
    for t in range(src_tokens.shape[0]):
        gh = jnp.dot(h.astype(jnp.bfloat16), prep["w_hh_t_bf16"],
                     preferred_element_type=jnp.float32) + prep["b_hh"]
        gi_t = gi[t:t + 1, :]
        r = jax.nn.sigmoid(gi_t[:, 0:H] + gh[:, 0:H])
        z = jax.nn.sigmoid(gi_t[:, H:2 * H] + gh[:, H:2 * H])
        n = jnp.tanh(gi_t[:, 2 * H:3 * H] + r * gh[:, 2 * H:3 * H])
        h = (1.0 - z) * n + z * h
        outs.append(h)
    return jnp.concatenate(outs, axis=0)


def init_params(key):
    k_emb, k_wih, k_whh, k_bih, k_bhh = jax.random.split(key, 5)
    scale = 1.0 / np.sqrt(HIDDEN)
    return {
        # torch.nn.Embedding(input_size, hidden_dim)
        "embedding": jax.random.normal(k_emb, (VOCAB, HIDDEN), jnp.float32),
        # torch.nn.GRU(hidden_dim, hidden_dim): weight_ih_l0 (3H, H) stored transposed
        "w_ih_t": jax.random.uniform(k_wih, (HIDDEN, 3 * HIDDEN), jnp.float32,
                                     minval=-scale, maxval=scale),
        "w_hh_t": jax.random.uniform(k_whh, (HIDDEN, 3 * HIDDEN), jnp.float32,
                                     minval=-scale, maxval=scale),
        "b_ih": jax.random.uniform(k_bih, (1, 3 * HIDDEN), jnp.float32,
                                   minval=-scale, maxval=scale),
        "b_hh": jax.random.uniform(k_bhh, (1, 3 * HIDDEN), jnp.float32,
                                   minval=-scale, maxval=scale),
    }


if __name__ == "__main__":
    key = jax.random.PRNGKey(0)
    params = init_params(key)
    prep = prepare_params(params)

    # Deterministic example inputs: SEQ source token ids and
    # initHidden() = zeros(num_layers, 1, hidden_dim).
    src_tokens = (jnp.arange(SEQ, dtype=jnp.int32) * 3) % VOCAB
    hidden0 = jnp.zeros((NUM_LAYERS, 1, HIDDEN), jnp.float32)

    # Full-sequence fused kernel (== looping Encoder.forward over src_tokens).
    seq_fn = jax.jit(encoder_forward_sequence)
    outputs, hidden = seq_fn(src_tokens, hidden0, prep)
    jax.block_until_ready((outputs, hidden))

    assert outputs.shape == (SEQ, 1, HIDDEN)
    assert hidden.shape == (NUM_LAYERS, 1, HIDDEN)
    assert bool(jnp.all(jnp.isfinite(outputs)))

    # Correctness vs. pure-JAX reference of the same math.
    ref = _reference_encoder_sequence(src_tokens, hidden0, prep)
    np.testing.assert_allclose(np.asarray(outputs.reshape(SEQ, HIDDEN)),
                               np.asarray(ref), rtol=2e-3, atol=2e-3)

    # Single-token path (exact module forward signature) agrees with step 0.
    memory_idx = src_tokens.reshape(SEQ, 1)
    x1, h1 = encoder_forward(src_tokens[0], hidden0, memory_idx, prep)
    jax.block_until_ready((x1, h1))
    assert x1.shape == (1, 1, HIDDEN) and h1.shape == (NUM_LAYERS, 1, HIDDEN)
    np.testing.assert_allclose(np.asarray(h1.reshape(HIDDEN)),
                               np.asarray(outputs[0].reshape(HIDDEN)),
                               rtol=2e-3, atol=2e-3)

    print("KERNEL_OK")
</pallas_src>

<mosaic_0001>
module attributes {stable_mosaic.version = 11 : i64} {
  func.func @gru_encoder_seq_kernel(%arg0: memref<8x128xbf16, #tpu.memory_space<vmem>>, %arg1: memref<1x128xf32, #tpu.memory_space<vmem>>, %arg2: memref<128x384xbf16, #tpu.memory_space<vmem>>, %arg3: memref<128x384xbf16, #tpu.memory_space<vmem>>, %arg4: memref<1x384xf32, #tpu.memory_space<vmem>>, %arg5: memref<1x384xf32, #tpu.memory_space<vmem>>, %arg6: memref<8x128xf32, #tpu.memory_space<vmem>>) attributes {dimension_semantics = [], scalar_prefetch = 0 : i64, scratch_operands = 0 : i64, tpu.core_type = #tpu.core_type<tc>} {
    %c0 = arith.constant 0 : index
    %c0_0 = arith.constant 0 : index
    %0 = vector.load %arg0[%c0, %c0_0] : memref<8x128xbf16, #tpu.memory_space<vmem>>, vector<8x128xbf16>
    %c0_1 = arith.constant 0 : index
    %c0_2 = arith.constant 0 : index
    %1 = vector.load %arg2[%c0_1, %c0_2] : memref<128x384xbf16, #tpu.memory_space<vmem>>, vector<128x384xbf16>
    %cst = arith.constant dense<0.000000e+00> : vector<8x384xf32>
    %2 = tpu.matmul %0, %1, %cst {dimension_numbers = #tpu.dot_dimension_numbers<[1], [0], [0], [1], [0, 0, 1, 1], [], []>} : vector<8x128xbf16>, vector<128x384xbf16>, vector<8x384xf32> -> vector<8x384xf32>
    %c0_3 = arith.constant 0 : index
    %c0_4 = arith.constant 0 : index
    %3 = vector.load %arg4[%c0_3, %c0_4] : memref<1x384xf32, #tpu.memory_space<vmem>>, vector<1x384xf32>
    %4 = vector.broadcast %3 : vector<1x384xf32> to vector<8x384xf32>
    %5 = arith.addf %2, %4 : vector<8x384xf32>
    %c0_5 = arith.constant 0 : index
    %c0_6 = arith.constant 0 : index
    %6 = vector.load %arg3[%c0_5, %c0_6] : memref<128x384xbf16, #tpu.memory_space<vmem>>, vector<128x384xbf16>
    %c0_7 = arith.constant 0 : index
    %c0_8 = arith.constant 0 : index
    %7 = vector.load %arg5[%c0_7, %c0_8] : memref<1x384xf32, #tpu.memory_space<vmem>>, vector<1x384xf32>
    %c0_9 = arith.constant 0 : index
    %c0_10 = arith.constant 0 : index
    %8 = vector.load %arg1[%c0_9, %c0_10] : memref<1x128xf32, #tpu.memory_space<vmem>>, vector<1x128xf32>
    %9 = arith.truncf %8 : vector<1x128xf32> to vector<1x128xbf16>
    %cst_11 = arith.constant dense<0.000000e+00> : vector<1x384xf32>
    %10 = tpu.matmul %9, %6, %cst_11 {dimension_numbers = #tpu.dot_dimension_numbers<[1], [0], [0], [1], [0, 0, 1, 1], [], []>} : vector<1x128xbf16>, vector<128x384xbf16>, vector<1x384xf32> -> vector<1x384xf32>
    %11 = arith.addf %10, %7 : vector<1x384xf32>
    %12 = vector.extract_strided_slice %5 {offsets = [0, 0], sizes = [1, 384], strides = [1, 1]} : vector<8x384xf32> to vector<1x384xf32>
    %13 = vector.extract_strided_slice %12 {offsets = [0, 0], sizes = [1, 128], strides = [1, 1]} : vector<1x384xf32> to vector<1x128xf32>
    %14 = vector.extract_strided_slice %11 {offsets = [0, 0], sizes = [1, 128], strides = [1, 1]} : vector<1x384xf32> to vector<1x128xf32>
    %15 = arith.addf %13, %14 : vector<1x128xf32>
    %16 = arith.negf %15 : vector<1x128xf32>
    %17 = math.exp %16 : vector<1x128xf32>
    %cst_12 = arith.constant 1.000000e+00 : f32
    %18 = vector.broadcast %cst_12 : f32 to vector<1x128xf32>
    %19 = arith.addf %18, %17 : vector<1x128xf32>
    %20 = arith.divf %18, %19 : vector<1x128xf32>
    %21 = vector.extract_strided_slice %12 {offsets = [0, 128], sizes = [1, 128], strides = [1, 1]} : vector<1x384xf32> to vector<1x128xf32>
    %22 = vector.extract_strided_slice %11 {offsets = [0, 128], sizes = [1, 128], strides = [1, 1]} : vector<1x384xf32> to vector<1x128xf32>
    %23 = arith.addf %21, %22 : vector<1x128xf32>
    %24 = arith.negf %23 : vector<1x128xf32>
    %25 = math.exp %24 : vector<1x128xf32>
    %cst_13 = arith.constant 1.000000e+00 : f32
    %26 = vector.broadcast %cst_13 : f32 to vector<1x128xf32>
    %27 = arith.addf %26, %25 : vector<1x128xf32>
    %28 = arith.divf %26, %27 : vector<1x128xf32>
    %29 = vector.extract_strided_slice %12 {offsets = [0, 256], sizes = [1, 128], strides = [1, 1]} : vector<1x384xf32> to vector<1x128xf32>
    %30 = vector.extract_strided_slice %11 {offsets = [0, 256], sizes = [1, 128], strides = [1, 1]} : vector<1x384xf32> to vector<1x128xf32>
    %31 = arith.mulf %20, %30 : vector<1x128xf32>
    %32 = arith.addf %29, %31 : vector<1x128xf32>
    %33 = math.tanh %32 : vector<1x128xf32>
    %cst_14 = arith.constant 1.000000e+00 : f32
    %34 = vector.broadcast %cst_14 : f32 to vector<1x128xf32>
    %35 = arith.subf %34, %28 : vector<1x128xf32>
    %36 = arith.mulf %35, %33 : vector<1x128xf32>
    %37 = arith.mulf %28, %8 : vector<1x128xf32>
    %38 = arith.addf %36, %37 : vector<1x128xf32>
    %39 = arith.truncf %38 : vector<1x128xf32> to vector<1x128xbf16>
    %cst_15 = arith.constant dense<0.000000e+00> : vector<1x384xf32>
    %40 = tpu.matmul %39, %6, %cst_15 {dimension_numbers = #tpu.dot_dimension_numbers<[1], [0], [0], [1], [0, 0, 1, 1], [], []>} : vector<1x128xbf16>, vector<128x384xbf16>, vector<1x384xf32> -> vector<1x384xf32>
    %41 = arith.addf %40, %7 : vector<1x384xf32>
    %42 = vector.extract_strided_slice %5 {offsets = [1, 0], sizes = [1, 384], strides = [1, 1]} : vector<8x384xf32> to vector<1x384xf32>
    %43 = vector.extract_strided_slice %42 {offsets = [0, 0], sizes = [1, 128], strides = [1, 1]} : vector<1x384xf32> to vector<1x128xf32>
    %44 = vector.extract_strided_slice %41 {offsets = [0, 0], sizes = [1, 128], strides = [1, 1]} : vector<1x384xf32> to vector<1x128xf32>
    %45 = arith.addf %43, %44 : vector<1x128xf32>
    %46 = arith.negf %45 : vector<1x128xf32>
    %47 = math.exp %46 : vector<1x128xf32>
    %cst_16 = arith.constant 1.000000e+00 : f32
    %48 = vector.broadcast %cst_16 : f32 to vector<1x128xf32>
    %49 = arith.addf %48, %47 : vector<1x128xf32>
    %50 = arith.divf %48, %49 : vector<1x128xf32>
    %51 = vector.extract_strided_slice %42 {offsets = [0, 128], sizes = [1, 128], strides = [1, 1]} : vector<1x384xf32> to vector<1x128xf32>
    %52 = vector.extract_strided_slice %41 {offsets = [0, 128], sizes = [1, 128], strides = [1, 1]} : vector<1x384xf32> to vector<1x128xf32>
    %53 = arith.addf %51, %52 : vector<1x128xf32>
    %54 = arith.negf %53 : vector<1x128xf32>
    %55 = math.exp %54 : vector<1x128xf32>
    %cst_17 = arith.constant 1.000000e+00 : f32
    %56 = vector.broadcast %cst_17 : f32 to vector<1x128xf32>
    %57 = arith.addf %56, %55 : vector<1x128xf32>
    %58 = arith.divf %56, %57 : vector<1x128xf32>
    %59 = vector.extract_strided_slice %42 {offsets = [0, 256], sizes = [1, 128], strides = [1, 1]} : vector<1x384xf32> to vector<1x128xf32>
    %60 = vector.extract_strided_slice %41 {offsets = [0, 256], sizes = [1, 128], strides = [1, 1]} : vector<1x384xf32> to vector<1x128xf32>
    %61 = arith.mulf %50, %60 : vector<1x128xf32>
    %62 = arith.addf %59, %61 : vector<1x128xf32>
    %63 = math.tanh %62 : vector<1x128xf32>
    %cst_18 = arith.constant 1.000000e+00 : f32
    %64 = vector.broadcast %cst_18 : f32 to vector<1x128xf32>
    %65 = arith.subf %64, %58 : vector<1x128xf32>
    %66 = arith.mulf %65, %63 : vector<1x128xf32>
    %67 = arith.mulf %58, %38 : vector<1x128xf32>
    %68 = arith.addf %66, %67 : vector<1x128xf32>
    %69 = arith.truncf %68 : vector<1x128xf32> to vector<1x128xbf16>
    %cst_19 = arith.constant dense<0.000000e+00> : vector<1x384xf32>
    %70 = tpu.matmul %69, %6, %cst_19 {dimension_numbers = #tpu.dot_dimension_numbers<[1], [0], [0], [1], [0, 0, 1, 1], [], []>} : vector<1x128xbf16>, vector<128x384xbf16>, vector<1x384xf32> -> vector<1x384xf32>
    %71 = arith.addf %70, %7 : vector<1x384xf32>
    %72 = vector.extract_strided_slice %5 {offsets = [2, 0], sizes = [1, 384], strides = [1, 1]} : vector<8x384xf32> to vector<1x384xf32>
    %73 = vector.extract_strided_slice %72 {offsets = [0, 0], sizes = [1, 128], strides = [1, 1]} : vector<1x384xf32> to vector<1x128xf32>
    %74 = vector.extract_strided_slice %71 {offsets = [0, 0], sizes = [1, 128], strides = [1, 1]} : vector<1x384xf32> to vector<1x128xf32>
    %75 = arith.addf %73, %74 : vector<1x128xf32>
    %76 = arith.negf %75 : vector<1x128xf32>
    %77 = math.exp %76 : vector<1x128xf32>
    %cst_20 = arith.constant 1.000000e+00 : f32
    %78 = vector.broadcast %cst_20 : f32 to vector<1x128xf32>
    %79 = arith.addf %78, %77 : vector<1x128xf32>
    %80 = arith.divf %78, %79 : vector<1x128xf32>
    %81 = vector.extract_strided_slice %72 {offsets = [0, 128], sizes = [1, 128], strides = [1, 1]} : vector<1x384xf32> to vector<1x128xf32>
    %82 = vector.extract_strided_slice %71 {offsets = [0, 128], sizes = [1, 128], strides = [1, 1]} : vector<1x384xf32> to vector<1x128xf32>
    %83 = arith.addf %81, %82 : vector<1x128xf32>
    %84 = arith.negf %83 : vector<1x128xf32>
    %85 = math.exp %84 : vector<1x128xf32>
    %cst_21 = arith.constant 1.000000e+00 : f32
    %86 = vector.broadcast %cst_21 : f32 to vector<1x128xf32>
    %87 = arith.addf %86, %85 : vector<1x128xf32>
    %88 = arith.divf %86, %87 : vector<1x128xf32>
    %89 = vector.extract_strided_slice %72 {offsets = [0, 256], sizes = [1, 128], strides = [1, 1]} : vector<1x384xf32> to vector<1x128xf32>
    %90 = vector.extract_strided_slice %71 {offsets = [0, 256], sizes = [1, 128], strides = [1, 1]} : vector<1x384xf32> to vector<1x128xf32>
    %91 = arith.mulf %80, %90 : vector<1x128xf32>
    %92 = arith.addf %89, %91 : vector<1x128xf32>
    %93 = math.tanh %92 : vector<1x128xf32>
    %cst_22 = arith.constant 1.000000e+00 : f32
    %94 = vector.broadcast %cst_22 : f32 to vector<1x128xf32>
    %95 = arith.subf %94, %88 : vector<1x128xf32>
    %96 = arith.mulf %95, %93 : vector<1x128xf32>
    %97 = arith.mulf %88, %68 : vector<1x128xf32>
    %98 = arith.addf %96, %97 : vector<1x128xf32>
    %99 = arith.truncf %98 : vector<1x128xf32> to vector<1x128xbf16>
    %cst_23 = arith.constant dense<0.000000e+00> : vector<1x384xf32>
    %100 = tpu.matmul %99, %6, %cst_23 {dimension_numbers = #tpu.dot_dimension_numbers<[1], [0], [0], [1], [0, 0, 1, 1], [], []>} : vector<1x128xbf16>, vector<128x384xbf16>, vector<1x384xf32> -> vector<1x384xf32>
    %101 = arith.addf %100, %7 : vector<1x384xf32>
    %102 = vector.extract_strided_slice %5 {offsets = [3, 0], sizes = [1, 384], strides = [1, 1]} : vector<8x384xf32> to vector<1x384xf32>
    %103 = vector.extract_strided_slice %102 {offsets = [0, 0], sizes = [1, 128], strides = [1, 1]} : vector<1x384xf32> to vector<1x128xf32>
    %104 = vector.extract_strided_slice %101 {offsets = [0, 0], sizes = [1, 128], strides = [1, 1]} : vector<1x384xf32> to vector<1x128xf32>
    %105 = arith.addf %103, %104 : vector<1x128xf32>
    %106 = arith.negf %105 : vector<1x128xf32>
    %107 = math.exp %106 : vector<1x128xf32>
    %cst_24 = arith.constant 1.000000e+00 : f32
    %108 = vector.broadcast %cst_24 : f32 to vector<1x128xf32>
    %109 = arith.addf %108, %107 : vector<1x128xf32>
    %110 = arith.divf %108, %109 : vector<1x128xf32>
    %111 = vector.extract_strided_slice %102 {offsets = [0, 128], sizes = [1, 128], strides = [1, 1]} : vector<1x384xf32> to vector<1x128xf32>
    %112 = vector.extract_strided_slice %101 {offsets = [0, 128], sizes = [1, 128], strides = [1, 1]} : vector<1x384xf32> to vector<1x128xf32>
    %113 = arith.addf %111, %112 : vector<1x128xf32>
    %114 = arith.negf %113 : vector<1x128xf32>
    %115 = math.exp %114 : vector<1x128xf32>
    %cst_25 = arith.constant 1.000000e+00 : f32
    %116 = vector.broadcast %cst_25 : f32 to vector<1x128xf32>
    %117 = arith.addf %116, %115 : vector<1x128xf32>
    %118 = arith.divf %116, %117 : vector<1x128xf32>
    %119 = vector.extract_strided_slice %102 {offsets = [0, 256], sizes = [1, 128], strides = [1, 1]} : vector<1x384xf32> to vector<1x128xf32>
    %120 = vector.extract_strided_slice %101 {offsets = [0, 256], sizes = [1, 128], strides = [1, 1]} : vector<1x384xf32> to vector<1x128xf32>
    %121 = arith.mulf %110, %120 : vector<1x128xf32>
    %122 = arith.addf %119, %121 : vector<1x128xf32>
    %123 = math.tanh %122 : vector<1x128xf32>
    %cst_26 = arith.constant 1.000000e+00 : f32
    %124 = vector.broadcast %cst_26 : f32 to vector<1x128xf32>
    %125 = arith.subf %124, %118 : vector<1x128xf32>
    %126 = arith.mulf %125, %123 : vector<1x128xf32>
    %127 = arith.mulf %118, %98 : vector<1x128xf32>
    %128 = arith.addf %126, %127 : vector<1x128xf32>
    %129 = arith.truncf %128 : vector<1x128xf32> to vector<1x128xbf16>
    %cst_27 = arith.constant dense<0.000000e+00> : vector<1x384xf32>
    %130 = tpu.matmul %129, %6, %cst_27 {dimension_numbers = #tpu.dot_dimension_numbers<[1], [0], [0], [1], [0, 0, 1, 1], [], []>} : vector<1x128xbf16>, vector<128x384xbf16>, vector<1x384xf32> -> vector<1x384xf32>
    %131 = arith.addf %130, %7 : vector<1x384xf32>
    %132 = vector.extract_strided_slice %5 {offsets = [4, 0], sizes = [1, 384], strides = [1, 1]} : vector<8x384xf32> to vector<1x384xf32>
    %133 = vector.extract_strided_slice %132 {offsets = [0, 0], sizes = [1, 128], strides = [1, 1]} : vector<1x384xf32> to vector<1x128xf32>
    %134 = vector.extract_strided_slice %131 {offsets = [0, 0], sizes = [1, 128], strides = [1, 1]} : vector<1x384xf32> to vector<1x128xf32>
    %135 = arith.addf %133, %134 : vector<1x128xf32>
    %136 = arith.negf %135 : vector<1x128xf32>
    %137 = math.exp %136 : vector<1x128xf32>
    %cst_28 = arith.constant 1.000000e+00 : f32
    %138 = vector.broadcast %cst_28 : f32 to vector<1x128xf32>
    %139 = arith.addf %138, %137 : vector<1x128xf32>
    %140 = arith.divf %138, %139 : vector<1x128xf32>
    %141 = vector.extract_strided_slice %132 {offsets = [0, 128], sizes = [1, 128], strides = [1, 1]} : vector<1x384xf32> to vector<1x128xf32>
    %142 = vector.extract_strided_slice %131 {offsets = [0, 128], sizes = [1, 128], strides = [1, 1]} : vector<1x384xf32> to vector<1x128xf32>
    %143 = arith.addf %141, %142 : vector<1x128xf32>
    %144 = arith.negf %143 : vector<1x128xf32>
    %145 = math.exp %144 : vector<1x128xf32>
    %cst_29 = arith.constant 1.000000e+00 : f32
    %146 = vector.broadcast %cst_29 : f32 to vector<1x128xf32>
    %147 = arith.addf %146, %145 : vector<1x128xf32>
    %148 = arith.divf %146, %147 : vector<1x128xf32>
    %149 = vector.extract_strided_slice %132 {offsets = [0, 256], sizes = [1, 128], strides = [1, 1]} : vector<1x384xf32> to vector<1x128xf32>
    %150 = vector.extract_strided_slice %131 {offsets = [0, 256], sizes = [1, 128], strides = [1, 1]} : vector<1x384xf32> to vector<1x128xf32>
    %151 = arith.mulf %140, %150 : vector<1x128xf32>
    %152 = arith.addf %149, %151 : vector<1x128xf32>
    %153 = math.tanh %152 : vector<1x128xf32>
    %cst_30 = arith.constant 1.000000e+00 : f32
    %154 = vector.broadcast %cst_30 : f32 to vector<1x128xf32>
    %155 = arith.subf %154, %148 : vector<1x128xf32>
    %156 = arith.mulf %155, %153 : vector<1x128xf32>
    %157 = arith.mulf %148, %128 : vector<1x128xf32>
    %158 = arith.addf %156, %157 : vector<1x128xf32>
    %159 = arith.truncf %158 : vector<1x128xf32> to vector<1x128xbf16>
    %cst_31 = arith.constant dense<0.000000e+00> : vector<1x384xf32>
    %160 = tpu.matmul %159, %6, %cst_31 {dimension_numbers = #tpu.dot_dimension_numbers<[1], [0], [0], [1], [0, 0, 1, 1], [], []>} : vector<1x128xbf16>, vector<128x384xbf16>, vector<1x384xf32> -> vector<1x384xf32>
    %161 = arith.addf %160, %7 : vector<1x384xf32>
    %162 = vector.extract_strided_slice %5 {offsets = [5, 0], sizes = [1, 384], strides = [1, 1]} : vector<8x384xf32> to vector<1x384xf32>
    %163 = vector.extract_strided_slice %162 {offsets = [0, 0], sizes = [1, 128], strides = [1, 1]} : vector<1x384xf32> to vector<1x128xf32>
    %164 = vector.extract_strided_slice %161 {offsets = [0, 0], sizes = [1, 128], strides = [1, 1]} : vector<1x384xf32> to vector<1x128xf32>
    %165 = arith.addf %163, %164 : vector<1x128xf32>
    %166 = arith.negf %165 : vector<1x128xf32>
    %167 = math.exp %166 : vector<1x128xf32>
    %cst_32 = arith.constant 1.000000e+00 : f32
    %168 = vector.broadcast %cst_32 : f32 to vector<1x128xf32>
    %169 = arith.addf %168, %167 : vector<1x128xf32>
    %170 = arith.divf %168, %169 : vector<1x128xf32>
    %171 = vector.extract_strided_slice %162 {offsets = [0, 128], sizes = [1, 128], strides = [1, 1]} : vector<1x384xf32> to vector<1x128xf32>
    %172 = vector.extract_strided_slice %161 {offsets = [0, 128], sizes = [1, 128], strides = [1, 1]} : vector<1x384xf32> to vector<1x128xf32>
    %173 = arith.addf %171, %172 : vector<1x128xf32>
    %174 = arith.negf %173 : vector<1x128xf32>
    %175 = math.exp %174 : vector<1x128xf32>
    %cst_33 = arith.constant 1.000000e+00 : f32
    %176 = vector.broadcast %cst_33 : f32 to vector<1x128xf32>
    %177 = arith.addf %176, %175 : vector<1x128xf32>
    %178 = arith.divf %176, %177 : vector<1x128xf32>
    %179 = vector.extract_strided_slice %162 {offsets = [0, 256], sizes = [1, 128], strides = [1, 1]} : vector<1x384xf32> to vector<1x128xf32>
    %180 = vector.extract_strided_slice %161 {offsets = [0, 256], sizes = [1, 128], strides = [1, 1]} : vector<1x384xf32> to vector<1x128xf32>
    %181 = arith.mulf %170, %180 : vector<1x128xf32>
    %182 = arith.addf %179, %181 : vector<1x128xf32>
    %183 = math.tanh %182 : vector<1x128xf32>
    %cst_34 = arith.constant 1.000000e+00 : f32
    %184 = vector.broadcast %cst_34 : f32 to vector<1x128xf32>
    %185 = arith.subf %184, %178 : vector<1x128xf32>
    %186 = arith.mulf %185, %183 : vector<1x128xf32>
    %187 = arith.mulf %178, %158 : vector<1x128xf32>
    %188 = arith.addf %186, %187 : vector<1x128xf32>
    %189 = arith.truncf %188 : vector<1x128xf32> to vector<1x128xbf16>
    %cst_35 = arith.constant dense<0.000000e+00> : vector<1x384xf32>
    %190 = tpu.matmul %189, %6, %cst_35 {dimension_numbers = #tpu.dot_dimension_numbers<[1], [0], [0], [1], [0, 0, 1, 1], [], []>} : vector<1x128xbf16>, vector<128x384xbf16>, vector<1x384xf32> -> vector<1x384xf32>
    %191 = arith.addf %190, %7 : vector<1x384xf32>
    %192 = vector.extract_strided_slice %5 {offsets = [6, 0], sizes = [1, 384], strides = [1, 1]} : vector<8x384xf32> to vector<1x384xf32>
    %193 = vector.extract_strided_slice %192 {offsets = [0, 0], sizes = [1, 128], strides = [1, 1]} : vector<1x384xf32> to vector<1x128xf32>
    %194 = vector.extract_strided_slice %191 {offsets = [0, 0], sizes = [1, 128], strides = [1, 1]} : vector<1x384xf32> to vector<1x128xf32>
    %195 = arith.addf %193, %194 : vector<1x128xf32>
    %196 = arith.negf %195 : vector<1x128xf32>
    %197 = math.exp %196 : vector<1x128xf32>
    %cst_36 = arith.constant 1.000000e+00 : f32
    %198 = vector.broadcast %cst_36 : f32 to vector<1x128xf32>
    %199 = arith.addf %198, %197 : vector<1x128xf32>
    %200 = arith.divf %198, %199 : vector<1x128xf32>
    %201 = vector.extract_strided_slice %192 {offsets = [0, 128], sizes = [1, 128], strides = [1, 1]} : vector<1x384xf32> to vector<1x128xf32>
    %202 = vector.extract_strided_slice %191 {offsets = [0, 128], sizes = [1, 128], strides = [1, 1]} : vector<1x384xf32> to vector<1x128xf32>
    %203 = arith.addf %201, %202 : vector<1x128xf32>
    %204 = arith.negf %203 : vector<1x128xf32>
    %205 = math.exp %204 : vector<1x128xf32>
    %cst_37 = arith.constant 1.000000e+00 : f32
    %206 = vector.broadcast %cst_37 : f32 to vector<1x128xf32>
    %207 = arith.addf %206, %205 : vector<1x128xf32>
    %208 = arith.divf %206, %207 : vector<1x128xf32>
    %209 = vector.extract_strided_slice %192 {offsets = [0, 256], sizes = [1, 128], strides = [1, 1]} : vector<1x384xf32> to vector<1x128xf32>
    %210 = vector.extract_strided_slice %191 {offsets = [0, 256], sizes = [1, 128], strides = [1, 1]} : vector<1x384xf32> to vector<1x128xf32>
    %211 = arith.mulf %200, %210 : vector<1x128xf32>
    %212 = arith.addf %209, %211 : vector<1x128xf32>
    %213 = math.tanh %212 : vector<1x128xf32>
    %cst_38 = arith.constant 1.000000e+00 : f32
    %214 = vector.broadcast %cst_38 : f32 to vector<1x128xf32>
    %215 = arith.subf %214, %208 : vector<1x128xf32>
    %216 = arith.mulf %215, %213 : vector<1x128xf32>
    %217 = arith.mulf %208, %188 : vector<1x128xf32>
    %218 = arith.addf %216, %217 : vector<1x128xf32>
    %219 = arith.truncf %218 : vector<1x128xf32> to vector<1x128xbf16>
    %cst_39 = arith.constant dense<0.000000e+00> : vector<1x384xf32>
    %220 = tpu.matmul %219, %6, %cst_39 {dimension_numbers = #tpu.dot_dimension_numbers<[1], [0], [0], [1], [0, 0, 1, 1], [], []>} : vector<1x128xbf16>, vector<128x384xbf16>, vector<1x384xf32> -> vector<1x384xf32>
    %221 = arith.addf %220, %7 : vector<1x384xf32>
    %222 = vector.extract_strided_slice %5 {offsets = [7, 0], sizes = [1, 384], strides = [1, 1]} : vector<8x384xf32> to vector<1x384xf32>
    %223 = vector.extract_strided_slice %222 {offsets = [0, 0], sizes = [1, 128], strides = [1, 1]} : vector<1x384xf32> to vector<1x128xf32>
    %224 = vector.extract_strided_slice %221 {offsets = [0, 0], sizes = [1, 128], strides = [1, 1]} : vector<1x384xf32> to vector<1x128xf32>
    %225 = arith.addf %223, %224 : vector<1x128xf32>
    %226 = arith.negf %225 : vector<1x128xf32>
    %227 = math.exp %226 : vector<1x128xf32>
    %cst_40 = arith.constant 1.000000e+00 : f32
    %228 = vector.broadcast %cst_40 : f32 to vector<1x128xf32>
    %229 = arith.addf %228, %227 : vector<1x128xf32>
    %230 = arith.divf %228, %229 : vector<1x128xf32>
    %231 = vector.extract_strided_slice %222 {offsets = [0, 128], sizes = [1, 128], strides = [1, 1]} : vector<1x384xf32> to vector<1x128xf32>
    %232 = vector.extract_strided_slice %221 {offsets = [0, 128], sizes = [1, 128], strides = [1, 1]} : vector<1x384xf32> to vector<1x128xf32>
    %233 = arith.addf %231, %232 : vector<1x128xf32>
    %234 = arith.negf %233 : vector<1x128xf32>
    %235 = math.exp %234 : vector<1x128xf32>
    %cst_41 = arith.constant 1.000000e+00 : f32
    %236 = vector.broadcast %cst_41 : f32 to vector<1x128xf32>
    %237 = arith.addf %236, %235 : vector<1x128xf32>
    %238 = arith.divf %236, %237 : vector<1x128xf32>
    %239 = vector.extract_strided_slice %222 {offsets = [0, 256], sizes = [1, 128], strides = [1, 1]} : vector<1x384xf32> to vector<1x128xf32>
    %240 = vector.extract_strided_slice %221 {offsets = [0, 256], sizes = [1, 128], strides = [1, 1]} : vector<1x384xf32> to vector<1x128xf32>
    %241 = arith.mulf %230, %240 : vector<1x128xf32>
    %242 = arith.addf %239, %241 : vector<1x128xf32>
    %243 = math.tanh %242 : vector<1x128xf32>
    %cst_42 = arith.constant 1.000000e+00 : f32
    %244 = vector.broadcast %cst_42 : f32 to vector<1x128xf32>
    %245 = arith.subf %244, %238 : vector<1x128xf32>
    %246 = arith.mulf %245, %243 : vector<1x128xf32>
    %247 = arith.mulf %238, %218 : vector<1x128xf32>
    %248 = arith.addf %246, %247 : vector<1x128xf32>
    %249 = tpu.concatenate %38, %68, %98, %128, %158, %188, %218, %248 in 0 : vector<1x128xf32>, vector<1x128xf32>, vector<1x128xf32>, vector<1x128xf32>, vector<1x128xf32>, vector<1x128xf32>, vector<1x128xf32>, vector<1x128xf32> -> vector<8x128xf32>
    %c0_43 = arith.constant 0 : index
    %c0_44 = arith.constant 0 : index
    %250 = vector.load %arg6[%c0_43, %c0_44] : memref<8x128xf32, #tpu.memory_space<vmem>>, vector<8x128xf32>
    tpu.vector_store %arg6[%c0_43, %c0_44], %249 {strides = array<i32>} : memref<8x128xf32, #tpu.memory_space<vmem>>, vector<8x128xf32>,
    return
  }
}

</mosaic_0001>

<bundles_post_ra>
// kernel: encoder_forward_sequence.1
= control target key start
LH: loop header
LB: loop body
LE: loop exit
PB: predicated region body
PF: predicated region fallthrough
CT: control target
= control target key end

     0   :  { %11 = vsyncpa [#allocation3], 0  ;;  %s2498_s0 = inlined_call_operand.vmem [shape: bf16[8,128], index: 0, kind: input, shape index: {}]   ;;  %s2499_s1 = inlined_call_operand.vmem [shape: f32[1,128], index: 1, kind: input, shape index: {}]   ;;  %s2500_s2 = inlined_call_operand.hbm [shape: bf16[128,384], index: 2, kind: input, shape index: {}]   ;;  %s2501_s3 = inlined_call_operand.hbm [shape: bf16[128,384], index: 3, kind: input, shape index: {}]   ;;  %s2502_s4 = inlined_call_operand.vmem [shape: f32[1,384], index: 4, kind: input, shape index: {}]   ;;  %s2503_s5 = inlined_call_operand.vmem [shape: f32[1,384], index: 5, kind: input, shape index: {}]   ;;  %s2504_s6 = inlined_call_operand.vmem [shape: f32[8,128], index: 6, kind: output, shape index: {}]  }
   0x1   :  { %12 = vsyncpa [#allocation5], 0  ;;  %s1989_s21 = smov [#allocation2]   ;;  %s1941_s25 = scalar_lea.hbm %s2500_s2, 3072 }
   0x2   :  { %s22_s22 = sshll.u32 %s1989_s21, 4  ;;  %p1942_p0 = scmp.ne.s32.totalorder %s2500_s2, %s1941_s25  ;;  %s23_s22 = int_to_ptr.vmem [resolvable:$true] %s22_s22 }
   0x3   :  { %p1945_p1 = scmp.lt.u32.totalorder %s1941_s25, %s2500_s2 }
   0x5   :  { %p1947_p2 = pnand %p1945_p1, %p1942_p0 }
   0x7   :  { %1950 = shalt.err (!%p1947_p2)
}
   0x8   :  { %s1951_s30 = scalar_lea.vmem %s23_s22, 3072  ;;  %p1956_p4 = scmp.lt.s32.totalorder %s23_s22, %s23_s22 }
   0x9   :  { %p1952_p3 = scmp.ne.s32.totalorder %s23_s22, %s1951_s30  ;;  %p1957_p5 = scmp.lt.s32.totalorder %s1951_s30, %s1951_s30 }
   0xb   :  { %p1958_p6 = por %p1957_p5, %p1956_p4 }
   0xd   :  { %p1959_p7 = pnand %p1958_p6, %p1952_p3 }
   0xf   :  { %1962 = shalt.err (!%p1959_p7)
}
  0x10   :  { %s1990_s7 = smov 192   ;;  %s1991_s8 = smov 12  }
  0x11   :  { %28 = dma.hbm_to_vmem [thread:$0]  %s2500_s2, 3072, %s23_s22, [#allocation3], %s1990_s7, %s1990_s7, %s1991_s8  }
  0x12   :  { %s1992_s11 = smov [#allocation4]   ;;  %s1963_s15 = scalar_lea.hbm %s2501_s3, 3072 }
  0x13   :  { %s34_s12 = sshll.u32 %s1992_s11, 4  ;;  %p1964_p8 = scmp.ne.s32.totalorder %s2501_s3, %s1963_s15  ;;  %s35_s12 = int_to_ptr.vmem [resolvable:$true] %s34_s12 }
  0x14   :  { %p1967_p9 = scmp.lt.u32.totalorder %s1963_s15, %s2501_s3 }
  0x16   :  { %p1969_p10 = pnand %p1967_p9, %p1964_p8 }
  0x18   :  { %1972 = shalt.err (!%p1969_p10)
}
  0x19   :  { %s1973_s20 = scalar_lea.vmem %s35_s12, 3072  ;;  %p1978_p12 = scmp.lt.s32.totalorder %s35_s12, %s35_s12 }
  0x1a   :  { %p1974_p11 = scmp.ne.s32.totalorder %s35_s12, %s1973_s20  ;;  %p1979_p13 = scmp.lt.s32.totalorder %s1973_s20, %s1973_s20 }
  0x1c   :  { %p1980_p0 = por %p1979_p13, %p1978_p12 }
  0x1e   :  { %p1981_p1 = pnand %p1980_p0, %p1974_p11 }
  0x20   :  { %1984 = shalt.err (!%p1981_p1)
}
  0x21   :  { %40 = dma.hbm_to_vmem [thread:$0]  %s2501_s3, 3072, %s35_s12, [#allocation5], %s1990_s7, %s1990_s7, %s1991_s8  }
  0x22   :  { %1985 = dma.done.wait [#allocation3], 3072  }
  0x23   :  { %1986 = vsyncadd [#allocation3], 4294964224 }
  0x24   :  { %1987 = dma.done.wait [#allocation5], 3072  }
  0x25   :  { %1988 = vsyncadd [#allocation5], 4294964224  ;;  %v1993_v0 = vmov 0.0   ;;  %v1994_v1 = vmov 0   ;;  %vm1995_vm0 = vmmov 0   ;;  %v87_v61 = vlaneseq }
  0x26   :  { %1586 = vmatprep.subr.bf16.mxu1 %v1993_v0  ;;  %262 = vmatprep.mubr.bf16.mxu0 %v1994_v1  ;;  %v1773_v2 = vld [vmem:[#allocation2 + $0x4] ss:$12 sps:$4 sm:$0xff]   ;;  %v1775_v3 = vld [vmem:[#allocation2] ss:$12 sps:$4 sm:$0xff]   ;;  %v1776_v4 = vld [vmem:[#allocation2 + $0x1c] ss:$12 sps:$4 sm:$0xff]  }
  0x27   :  { %1602 = vmatprep.mubr.msk.bf16.mxu1 %vm1995_vm0, %v1993_v0  ;;  %230 = vmatprep.subr.bf16.mxu0 %v1773_v2  ;;  %v1778_v5 = vld [vmem:[#allocation2 + $0x18] ss:$12 sps:$4 sm:$0xff]   ;;  %v1779_v6 = vld [vmem:[#allocation2 + $0x34] ss:$12 sps:$4 sm:$0xff]   ;;  %v1781_v7 = vld [vmem:[#allocation2 + $0x30] ss:$12 sps:$4 sm:$0xff]  }
  0x28   :  { %231 = vmatpush1.bf16.msra.mxu0 %v1775_v3  ;;  %v1782_v8 = vld [vmem:[#allocation2 + $0x4c] ss:$12 sps:$4 sm:$0xff]   ;;  %v1794_v9 = vld [vmem:[#allocation2 + $0x8] ss:$12 sps:$4 sm:$0xff]   ;;  %v1785_v11 = vld [vmem:[#allocation2 + $0x64] ss:$12 sps:$4 sm:$0xff]  }
  0x29   :  { %232 = vmatprep.subr.bf16.mxu0 %v1776_v4  ;;  %v1784_v10 = vld [vmem:[#allocation2 + $0x48] ss:$12 sps:$4 sm:$0xff]   ;;  %1587 = vmatpush3.bf16.msra.mxu1 %v1794_v9  ;;  %v1798_v12 = vld [vmem:[#allocation2 + $0x20] ss:$12 sps:$4 sm:$0xff]   ;;  %v1802_v15 = vld [vmem:[#allocation2 + $0x38] ss:$12 sps:$4 sm:$0xff]  }
  0x2a   :  { %1588 = vmatprep.subr.bf16.mxu1 %v1993_v0  ;;  %v1787_v13 = vld [vmem:[#allocation2 + $0x60] ss:$12 sps:$4 sm:$0xff]   ;;  %v1788_v14 = vld [vmem:[#allocation2 + $0x7c] ss:$12 sps:$4 sm:$0xff]   ;;  %v1790_v16 = vld [vmem:[#allocation2 + $0x78] ss:$12 sps:$4 sm:$0xff]  }
  0x2b   :  { %v1791_v17 = vld [vmem:[#allocation2 + $0x94] ss:$12 sps:$4 sm:$0xff]   ;;  %v1806_v18 = vld [vmem:[#allocation2 + $0x50] ss:$12 sps:$4 sm:$0xff]   ;;  %v1795_v20 = vld [vmem:[#allocation2 + $0xac] ss:$12 sps:$4 sm:$0xff]  }
  0x2c   :  { %233 = vmatpush1.bf16.msra.mxu0 %v1778_v5  ;;  %v1793_v19 = vld [vmem:[#allocation2 + $0x90] ss:$12 sps:$4 sm:$0xff]   ;;  %v1810_v21 = vld [vmem:[#allocation2 + $0x68] ss:$12 sps:$4 sm:$0xff]   ;;  %v1814_v24 = vld [vmem:[#allocation2 + $0x80] ss:$12 sps:$4 sm:$0xff]  }
  0x2d   :  { %234 = vmatprep.subr.bf16.mxu0 %v1779_v6  ;;  %1589 = vmatpush3.bf16.msra.mxu1 %v1798_v12  ;;  %v1797_v22 = vld [vmem:[#allocation2 + $0xa8] ss:$12 sps:$4 sm:$0xff]   ;;  %v2063_v23 = vld [vmem:[#allocation4 + $0x4] ss:$12 sps:$4 sm:$0xff]   ;;  %v52_v25 = vld [vmem:[%s2498_s0] sm:$0xf] }
  0x2e   :  { %1590 = vmatprep.subr.bf16.mxu1 %v1993_v0  ;;  %v2069_v26 = vld [vmem:[#allocation4] ss:$12 sps:$4 sm:$0xff]   ;;  %v2071_v27 = vld [vmem:[#allocation4 + $0x1c] ss:$12 sps:$4 sm:$0xff]   ;;  %v1818_v28 = vld [vmem:[#allocation2 + $0x98] ss:$12 sps:$4 sm:$0xff]  }
  0x2f   :  { %v2075_v29 = vld [vmem:[#allocation4 + $0x18] ss:$12 sps:$4 sm:$0xff]   ;;  %v2078_v30 = vld [vmem:[#allocation4 + $0x34] ss:$12 sps:$4 sm:$0xff]   ;;  %v1822_v31 = vld [vmem:[#allocation2 + $0xb0] ss:$12 sps:$4 sm:$0xff]  }
  0x30   :  { %235 = vmatpush1.bf16.msra.mxu0 %v1781_v7  ;;  %v2084_v32 = vld [vmem:[#allocation4 + $0x30] ss:$12 sps:$4 sm:$0xff]   ;;  %v2087_v33 = vld [vmem:[#allocation4 + $0x4c] ss:$12 sps:$4 sm:$0xff]   ;;  %v2089_v34 = vld [vmem:[#allocation4 + $0x8] ss:$12 sps:$4 sm:$0xff]  }
  0x31   :  { %236 = vmatprep.subr.bf16.mxu0 %v1782_v8  ;;  %1591 = vmatpush3.bf16.msra.mxu1 %v1802_v15  ;;  %v2093_v35 = vld [vmem:[#allocation4 + $0x48] ss:$12 sps:$4 sm:$0xff]   ;;  %v2096_v36 = vld [vmem:[#allocation4 + $0x64] ss:$12 sps:$4 sm:$0xff]   ;;  %v2099_v37 = vld [vmem:[#allocation4 + $0x20] ss:$12 sps:$4 sm:$0xff]  }
  0x32   :  { %1592 = vmatprep.subr.bf16.mxu1 %v1993_v0  ;;  %v2105_v38 = vld [vmem:[#allocation4 + $0x60] ss:$12 sps:$4 sm:$0xff]   ;;  %v2108_v39 = vld [vmem:[#allocation4 + $0x7c] ss:$12 sps:$4 sm:$0xff]   ;;  %v2111_v40 = vld [vmem:[#allocation4 + $0x38] ss:$12 sps:$4 sm:$0xff]  }
  0x33   :  { %v2115_v41 = vld [vmem:[#allocation4 + $0x78] ss:$12 sps:$4 sm:$0xff]   ;;  %v2118_v42 = vld [vmem:[#allocation4 + $0x94] ss:$12 sps:$4 sm:$0xff]   ;;  %v2121_v43 = vld [vmem:[#allocation4 + $0x50] ss:$12 sps:$4 sm:$0xff]  }
  0x34   :  { %237 = vmatpush1.bf16.msra.mxu0 %v1784_v10  ;;  %v2125_v44 = vld [vmem:[#allocation4 + $0x90] ss:$12 sps:$4 sm:$0xff]   ;;  %v2128_v45 = vld [vmem:[#allocation4 + $0xac] ss:$12 sps:$4 sm:$0xff]   ;;  %v2131_v46 = vld [vmem:[#allocation4 + $0x68] ss:$12 sps:$4 sm:$0xff]  }
  0x35   :  { %238 = vmatprep.subr.bf16.mxu0 %v1785_v11  ;;  %1593 = vmatpush3.bf16.msra.mxu1 %v1806_v18  ;;  %v2135_v47 = vld [vmem:[#allocation4 + $0xa8] ss:$12 sps:$4 sm:$0xff]   ;;  %v2140_v48 = vld [vmem:[%s2499_s1] sm:$0x1]  ;;  %v2151_v51 = vld [vmem:[#allocation4 + $0x98] ss:$12 sps:$4 sm:$0xff]  }
  0x36   :  { %1594 = vmatprep.subr.bf16.mxu1 %v1993_v0  ;;  %v2144_v49 = vld [vmem:[#allocation4 + $0x80] ss:$12 sps:$4 sm:$0xff]   ;;  %v345_v50 = vpack.c.bf16 %v2140_v48, %v2140_v48  ;;  %v2158_v52 = vld [vmem:[#allocation4 + $0xb0] ss:$12 sps:$4 sm:$0xff]   ;;  %v88_v62 = vshrl.u32 %v87_v61, 7  ;;  %vm1420_vm1 = vcmask 1040384  }
  0x37   :  { %v85_v2 = vld [vmem:[%s2502_s4] sm:$0x7]  ;;  %vm1422_vm2 = vcmask 1041408   ;;  %vm1424_vm3 = vcmask 1042432   ;;  %vm1426_vm4 = vcmask 1043456   ;;  %vm1428_vm5 = vcmask 1044480  }
  0x38   :  { %239 = vmatpush1.bf16.msra.mxu0 %v1787_v13  ;;  %v89_v63 = vsub.s32 0, %v88_v62  ;;  %v343_v3 = vld [vmem:[%s2503_s5] sm:$0x7]  ;;  %v93_v4 = vsub.s32 1, %v88_v62  ;;  %vm1430_vm6 = vcmask 1045504   ;;  %vm1432_vm7 = vcmask 1046528  }
  0x39   :  { %240 = vmatprep.subr.bf16.mxu0 %v1788_v14  ;;  %1595 = vmatpush3.bf16.msra.mxu1 %v1810_v21 }
  0x3a   :  { %1596 = vmatprep.subr.bf16.mxu1 %v1993_v0  ;;  %v90_v5 = vrot.slane %v85_v2, %v89_v63  ;;  %v2202_v6 = vrot.slane %v343_v3, %v89_v63  ;;  %v2204_v7 = vrot.slane %v343_v3, %v93_v4  ;;  %v94_v8 = vrot.slane %v85_v2, %v93_v4 }
  0x3c   :  { %241 = vmatpush1.bf16.msra.mxu0 %v1790_v16 }
  0x3d   :  { %242 = vmatprep.subr.bf16.mxu0 %v1791_v17  ;;  %1597 = vmatpush3.bf16.msra.mxu1 %v1814_v24 }
  0x3e   :  { %1598 = vmatprep.subr.bf16.mxu1 %v1993_v0 }
  0x40   :  { %243 = vmatpush1.bf16.msra.mxu0 %v1793_v19 }
  0x41   :  { %244 = vmatprep.subr.bf16.mxu0 %v1795_v20  ;;  %1599 = vmatpush3.bf16.msra.mxu1 %v1818_v28 }
  0x42   :  { %1600 = vmatprep.subr.bf16.mxu1 %v1993_v0 }
  0x44   :  { %245 = vmatpush1.bf16.msra.mxu0 %v1797_v22 }
  0x45   :  { %490 = vmatprep.subr.bf16.mxu0 %v2063_v23  ;;  %1601 = vmatpush3.bf16.msra.mxu1 %v1822_v31 }
  0x46   :  { %1606 = vmatprep.subr.bf16.mxu1 %v1993_v0 }
  0x47   :  { %263 = vmatmul.mubr.bf16.vlgmr.msra.gmra.mrb[0].mxu0 %v52_v25 }
  0x48   :  { %491 = vmatpush1.bf16.msra.mxu0 %v2069_v26  ;;  %522 = vmatprep.mubr.bf16.mxu0 %v1994_v1 }
  0x49   :  { %492 = vmatprep.subr.bf16.mxu0 %v2071_v27  ;;  %1603 = vmatmul.mubr.bf16.vlgmr.msra.gmra.mrb[0].mxu1 %v52_v25 }
  0x4a   :  { %1607 = vmatpush3.bf16.msra.mxu1 %v2089_v34  ;;  %1622 = vmatprep.mubr.msk.bf16.mxu1 %vm1995_vm0, %v1993_v0 }
  0x4b   :  { %1608 = vmatprep.subr.bf16.mxu1 %v1993_v0 }
  0x4c   :  { %493 = vmatpush1.bf16.msra.mxu0 %v2075_v29 }
  0x4d   :  { %494 = vmatprep.subr.bf16.mxu0 %v2078_v30 }
  0x4e   :  { %1609 = vmatpush3.bf16.msra.mxu1 %v2099_v37 }
  0x4f   :  { %1610 = vmatprep.subr.bf16.mxu1 %v1993_v0 }
  0x50   :  { %495 = vmatpush1.bf16.msra.mxu0 %v2084_v32 }
  0x51   :  { %496 = vmatprep.subr.bf16.mxu0 %v2087_v33 }
  0x52   :  { %1611 = vmatpush3.bf16.msra.mxu1 %v2111_v40 }
  0x53   :  { %1612 = vmatprep.subr.bf16.mxu1 %v1993_v0 }
  0x54   :  { %497 = vmatpush1.bf16.msra.mxu0 %v2093_v35 }
  0x55   :  { %498 = vmatprep.subr.bf16.mxu0 %v2096_v36 }
  0x56   :  { %1613 = vmatpush3.bf16.msra.mxu1 %v2121_v43 }
  0x57   :  { %1614 = vmatprep.subr.bf16.mxu1 %v1993_v0 }
  0x58   :  { %499 = vmatpush1.bf16.msra.mxu0 %v2105_v38 }
  0x59   :  { %500 = vmatprep.subr.bf16.mxu0 %v2108_v39 }
  0x5a   :  { %1615 = vmatpush3.bf16.msra.mxu1 %v2131_v46 }
  0x5b   :  { %1616 = vmatprep.subr.bf16.mxu1 %v1993_v0 }
  0x5c   :  { %501 = vmatpush1.bf16.msra.mxu0 %v2115_v41 }
  0x5d   :  { %502 = vmatprep.subr.bf16.mxu0 %v2118_v42 }
  0x5e   :  { %1617 = vmatpush3.bf16.msra.mxu1 %v2144_v49 }
  0x5f   :  { %1618 = vmatprep.subr.bf16.mxu1 %v1993_v0 }
  0x60   :  { %503 = vmatpush1.bf16.msra.mxu0 %v2125_v44 }
  0x61   :  { %504 = vmatprep.subr.bf16.mxu0 %v2128_v45 }
  0x62   :  { %1619 = vmatpush3.bf16.msra.mxu1 %v2151_v51 }
  0x63   :  { %1620 = vmatprep.subr.bf16.mxu1 %v1993_v0 }
  0x64   :  { %505 = vmatpush1.bf16.msra.mxu0 %v2135_v47 }
  0x65   :  { %593 = vmatprep.subr.bf16.mxu0 %v2063_v23 }
  0x66   :  { %1621 = vmatpush3.bf16.msra.mxu1 %v2158_v52 }
  0x67   :  { %523 = vmatmul.mubr.bf16.vlgmr.msra.gmra.mrb[4].mxu0 %v345_v50  ;;  %1626 = vmatprep.subr.bf16.mxu1 %v1993_v0 }
  0x68   :  { %594 = vmatpush1.bf16.msra.mxu0 %v2069_v26  ;;  %625 = vmatprep.mubr.bf16.mxu0 %v1994_v1 }
  0x69   :  { %595 = vmatprep.subr.bf16.mxu0 %v2071_v27  ;;  %1623 = vmatmul.mubr.bf16.vlgmr.msra.gmra.mrb[4].mxu1 %v345_v50  ;;  %v97_v50 = vsub.s32 2, %v88_v62 }
  0x6a   :  { %1627 = vmatpush3.bf16.msra.mxu1 %v2089_v34  ;;  %1642 = vmatprep.mubr.msk.bf16.mxu1 %vm1995_vm0, %v1993_v0 }
  0x6b   :  { %1628 = vmatprep.subr.bf16.mxu1 %v1993_v0 }
  0x6c   :  { %596 = vmatpush1.bf16.msra.mxu0 %v2075_v29 }
  0x6d   :  { %597 = vmatprep.subr.bf16.mxu0 %v2078_v30 }
  0x6e   :  { %1629 = vmatpush3.bf16.msra.mxu1 %v2099_v37 }
  0x6f   :  { %1630 = vmatprep.subr.bf16.mxu1 %v1993_v0 }
  0x70   :  { %598 = vmatpush1.bf16.msra.mxu0 %v2084_v32 }
  0x71   :  { %599 = vmatprep.subr.bf16.mxu0 %v2087_v33 }
  0x72   :  { %1631 = vmatpush3.bf16.msra.mxu1 %v2111_v40 }
  0x73   :  { %1632 = vmatprep.subr.bf16.mxu1 %v1993_v0 }
  0x74   :  { %600 = vmatpush1.bf16.msra.mxu0 %v2093_v35 }
  0x75   :  { %601 = vmatprep.subr.bf16.mxu0 %v2096_v36 }
  0x76   :  { %1633 = vmatpush3.bf16.msra.mxu1 %v2121_v43 }
  0x77   :  { %1634 = vmatprep.subr.bf16.mxu1 %v1993_v0 }
  0x78   :  { %602 = vmatpush1.bf16.msra.mxu0 %v2105_v38 }
  0x79   :  { %603 = vmatprep.subr.bf16.mxu0 %v2108_v39 }
  0x7a   :  { %1635 = vmatpush3.bf16.msra.mxu1 %v2131_v46 }
  0x7b   :  { %1636 = vmatprep.subr.bf16.mxu1 %v1993_v0 }
  0x7c   :  { %604 = vmatpush1.bf16.msra.mxu0 %v2115_v41 }
  0x7d   :  { %605 = vmatprep.subr.bf16.mxu0 %v2118_v42 }
  0x7e   :  { %1637 = vmatpush3.bf16.msra.mxu1 %v2144_v49 }
  0x7f   :  { %1638 = vmatprep.subr.bf16.mxu1 %v1993_v0 }
  0x80   :  { %606 = vmatpush1.bf16.msra.mxu0 %v2125_v44 }
  0x81   :  { %607 = vmatprep.subr.bf16.mxu0 %v2128_v45 }
  0x82   :  { %1639 = vmatpush3.bf16.msra.mxu1 %v2151_v51 }
  0x83   :  { %1640 = vmatprep.subr.bf16.mxu1 %v1993_v0 }
  0x84   :  { %608 = vmatpush1.bf16.msra.mxu0 %v2135_v47 }
  0x85   :  { %712 = vmatprep.subr.bf16.mxu0 %v2063_v23 }
  0x86   :  { %1641 = vmatpush3.bf16.msra.mxu1 %v2158_v52 }
  0x87   :  { %1646 = vmatprep.subr.bf16.mxu1 %v1993_v0 }
 0x11a   :  { %v264_v53 = vpop.f32.mrb[0].mxu0 }
 0x11b   :  { %v266_v54 = vpop.f32.mrb[1].mxu0  ;;  %v2206_v10 = vadd.f32 %v264_v53, %v90_v5  ;;  %v2214_v53 = vrot.slane %v343_v3, %v97_v50 }
 0x11c   :  { %v268_v55 = vpop.f32.mrb[2].mxu0  ;;  %v305_v57 = vpop.f32.mrb[0].mxu1  ;;  %v2211_v17 = vadd.f32 %v266_v54, %v94_v8 }
 0x11d   :  { %v269_v56 = vpop.f32.mrb[3].mxu0  ;;  %v1604_v58 = vpop.f32.mrb[1].mxu1 }
 0x11e   :  { %v308_v59 = vpop.f32.mrb[2].mxu1  ;;  %v98_v56 = vrot.slane %v85_v2, %v97_v50 }
 0x11f   :  { %v1605_v60 = vpop.f32.mrb[3].mxu1 }
 0x120   :  { %v2217_v60 = vadd.f32 %v305_v57, %v98_v56 }
 0x13a   :  { %v524_v9 = vpop.f32.mrb[4].mxu0 }
 0x13b   :  { %v525_v11 = vadd.f32 %v524_v9, %v2202_v6  ;;  %v526_v12 = vpop.f32.mrb[5].mxu0 }
 0x13c   :  { %v527_v13 = vadd.f32 %v526_v12, %v2204_v7  ;;  %v528_v14 = vpop.f32.mrb[6].mxu0  ;;  %v565_v20 = vpop.f32.mrb[4].mxu1 }
 0x13d   :  { %v571_v15 = vadd.f32 %v525_v11, %v2206_v10  ;;  %v529_v16 = vpop.f32.mrb[7].mxu0  ;;  %v1624_v22 = vpop.f32.mrb[5].mxu1  ;;  %v566_v58 = vadd.f32 %v565_v20, %v2214_v53 }
 0x13e   :  { %v578_v19 = vadd.f32 %v527_v13, %v2211_v17  ;;  %v568_v24 = vpop.f32.mrb[6].mxu1 }
 0x13f   :  { %v1489_v18 = vmul.f32 -1.442695, %v571_v15  ;;  %v1625_v25 = vpop.f32.mrb[7].mxu1 }
 0x140   :  { %v1490_v21 = vmul.f32 -1.442695, %v578_v19 }
 0x141   :  { %1837 = vpow2.f32 %v1489_v18 }
 0x142   :  { %1839 = vpow2.f32 %v1490_v21 }
 0x14b   :  { %v1838_v28 = vpop.eup %1837 }
 0x14c   :  { %v575_v31 = vadd.f32 1.0, %v1838_v28  ;;  %v1840_v55 = vpop.eup %1839 }
 0x14d   :  { %v582_v54 = vadd.f32 1.0, %v1840_v55 }
 0x14e   :  { %1841 = vrcp.f32 %v575_v31 }
 0x14f   :  { %1843 = vrcp.f32 %v582_v54 }
 0x158   :  { %v1842_v59 = vpop.eup %1841 }
 0x159   :  { %v585_v61 = vmul.f32 %v1842_v59, %v566_v58  ;;  %v1844_v4 = vpop.eup %1843 }
 0x15a   :  { %v588_v5 = vsub.f32 1.0, %v1844_v4  ;;  %v590_v62 = vmul.f32 %v1844_v4, %v2140_v48 }
 0x15b   :  { %v586_v63 = vadd.f32 %v585_v61, %v2217_v60 }
 0x15d   :  { %1845 = vtanh.f32 %v586_v63 }
 0x167   :  { %v1846_v8 = vpop.eup %1845 }
 0x168   :  { %v589_v9 = vmul.f32 %v1846_v8, %v588_v5 }
 0x16a   :  { %v2221_v3 = vadd.f32 %v590_v62, %v589_v9 }
 0x16c   :  { %v592_v2 = vpack.c.bf16 %v2221_v3, %v2221_v3  ;;  %v703_v8 = vrot.slane %v2221_v3, 7 }
 0x16e   :  { %626 = vmatmul.mubr.bf16.vlgmr.msra.gmra.mrb[8].mxu0 %v592_v2  ;;  %1643 = vmatmul.mubr.bf16.vlgmr.msra.gmra.mrb[8].mxu1 %v592_v2 }
 0x16f   :  { %713 = vmatpush1.bf16.msra.mxu0 %v2069_v26  ;;  %1647 = vmatpush3.bf16.msra.mxu1 %v2089_v34 }
 0x170   :  { %714 = vmatprep.subr.bf16.mxu0 %v2071_v27  ;;  %1648 = vmatprep.subr.bf16.mxu1 %v1993_v0 }
 0x171   :  { %744 = vmatprep.mubr.bf16.mxu0 %v1994_v1  ;;  %1662 = vmatprep.mubr.msk.bf16.mxu1 %vm1995_vm0, %v1993_v0 }
 0x173   :  { %715 = vmatpush1.bf16.msra.mxu0 %v2075_v29  ;;  %1649 = vmatpush3.bf16.msra.mxu1 %v2099_v37 }
 0x174   :  { %716 = vmatprep.subr.bf16.mxu0 %v2078_v30  ;;  %1650 = vmatprep.subr.bf16.mxu1 %v1993_v0 }
 0x177   :  { %717 = vmatpush1.bf16.msra.mxu0 %v2084_v32  ;;  %1651 = vmatpush3.bf16.msra.mxu1 %v2111_v40 }
 0x178   :  { %718 = vmatprep.subr.bf16.mxu0 %v2087_v33  ;;  %1652 = vmatprep.subr.bf16.mxu1 %v1993_v0 }
 0x17b   :  { %719 = vmatpush1.bf16.msra.mxu0 %v2093_v35  ;;  %1653 = vmatpush3.bf16.msra.mxu1 %v2121_v43 }
 0x17c   :  { %720 = vmatprep.subr.bf16.mxu0 %v2096_v36  ;;  %1654 = vmatprep.subr.bf16.mxu1 %v1993_v0 }
 0x17f   :  { %721 = vmatpush1.bf16.msra.mxu0 %v2105_v38  ;;  %1655 = vmatpush3.bf16.msra.mxu1 %v2131_v46 }
 0x180   :  { %722 = vmatprep.subr.bf16.mxu0 %v2108_v39  ;;  %1656 = vmatprep.subr.bf16.mxu1 %v1993_v0 }
 0x183   :  { %723 = vmatpush1.bf16.msra.mxu0 %v2115_v41  ;;  %1657 = vmatpush3.bf16.msra.mxu1 %v2144_v49 }
 0x184   :  { %724 = vmatprep.subr.bf16.mxu0 %v2118_v42  ;;  %1658 = vmatprep.subr.bf16.mxu1 %v1993_v0 }
 0x187   :  { %725 = vmatpush1.bf16.msra.mxu0 %v2125_v44  ;;  %1659 = vmatpush3.bf16.msra.mxu1 %v2151_v51 }
 0x188   :  { %726 = vmatprep.subr.bf16.mxu0 %v2128_v45  ;;  %1660 = vmatprep.subr.bf16.mxu1 %v1993_v0 }
 0x18b   :  { %727 = vmatpush1.bf16.msra.mxu0 %v2135_v47  ;;  %1661 = vmatpush3.bf16.msra.mxu1 %v2158_v52 }
 0x18c   :  { %830 = vmatprep.subr.bf16.mxu0 %v2063_v23  ;;  %1666 = vmatprep.subr.bf16.mxu1 %v1993_v0 }
 0x241   :  { %v627_v48 = vpop.f32.mrb[8].mxu0  ;;  %v668_v57 = vpop.f32.mrb[8].mxu1 }
 0x242   :  { %v628_v11 = vadd.f32 %v627_v48, %v2202_v6  ;;  %v629_v12 = vpop.f32.mrb[9].mxu0  ;;  %v1644_v13 = vpop.f32.mrb[9].mxu1  ;;  %v669_v56 = vadd.f32 %v668_v57, %v2214_v53 }
 0x243   :  { %v630_v14 = vadd.f32 %v629_v12, %v2204_v7  ;;  %v631_v15 = vpop.f32.mrb[10].mxu0  ;;  %v671_v16 = vpop.f32.mrb[10].mxu1 }
 0x244   :  { %v675_v18 = vrot.slane %v628_v11, 7  ;;  %v632_v19 = vpop.f32.mrb[11].mxu0  ;;  %v1645_v20 = vpop.f32.mrb[11].mxu1  ;;  %v695_v58 = vrot.slane %v669_v56, 7 }
 0x245   :  { %v685_v21 = vrot.slane %v630_v14, 7 }
 0x246   :  { %v677_v22 = vadd.f32 %v675_v18, %v2206_v10 }
 0x247   :  { %v687_v25 = vadd.f32 %v685_v21, %v2211_v17 }
 0x248   :  { %v1491_v24 = vmul.f32 -1.442695, %v677_v22 }
 0x249   :  { %v1492_v28 = vmul.f32 -1.442695, %v687_v25 }
 0x24a   :  { %1847 = vpow2.f32 %v1491_v24 }
 0x24b   :  { %1849 = vpow2.f32 %v1492_v28 }
 0x254   :  { %v1848_v31 = vpop.eup %1847 }
 0x255   :  { %v681_v50 = vadd.f32 1.0, %v1848_v31  ;;  %v1850_v55 = vpop.eup %1849 }
 0x256   :  { %v691_v54 = vadd.f32 1.0, %v1850_v55 }
 0x257   :  { %1851 = vrcp.f32 %v681_v50 }
 0x258   :  { %1853 = vrcp.f32 %v691_v54 }
 0x261   :  { %v1852_v59 = vpop.eup %1851 }
 0x262   :  { %v697_v61 = vmul.f32 %v1852_v59, %v695_v58  ;;  %v1854_v4 = vpop.eup %1853 }
 0x263   :  { %v700_v5 = vsub.f32 1.0, %v1854_v4  ;;  %v705_v2 = vmul.f32 %v1854_v4, %v703_v8 }
 0x264   :  { %v698_v63 = vadd.f32 %v697_v61, %v2217_v60 }
 0x266   :  { %1855 = vtanh.f32 %v698_v63 }
 0x270   :  { %v1856_v9 = vpop.eup %1855 }
 0x271   :  { %v701_v62 = vmul.f32 %v1856_v9, %v700_v5 }
 0x273   :  { %v2267_v48 = vadd.f32 %v705_v2, %v701_v62 }
 0x275   :  { %v707_v57 = vpack.c.bf16 %v2267_v48, %v2267_v48  ;;  %v822_v5 = vrot.slane %v2267_v48, 7 }
 0x277   :  { %v709_v11 = vshrl.u32 %v707_v57, 16 }
 0x279   :  { %745 = vmatmul.mubr.bf16.vlgmr.msra.gmra.mrb[12].mxu0 %v709_v11  ;;  %1663 = vmatmul.mubr.bf16.vlgmr.msra.gmra.mrb[12].mxu1 %v709_v11 }
 0x27a   :  { %831 = vmatpush1.bf16.msra.mxu0 %v2069_v26  ;;  %1667 = vmatpush3.bf16.msra.mxu1 %v2089_v34 }
 0x27b   :  { %832 = vmatprep.subr.bf16.mxu0 %v2071_v27  ;;  %1668 = vmatprep.subr.bf16.mxu1 %v1993_v0 }
 0x27c   :  { %862 = vmatprep.mubr.bf16.mxu0 %v1994_v1  ;;  %1682 = vmatprep.mubr.msk.bf16.mxu1 %vm1995_vm0, %v1993_v0 }
 0x27e   :  { %833 = vmatpush1.bf16.msra.mxu0 %v2075_v29  ;;  %1669 = vmatpush3.bf16.msra.mxu1 %v2099_v37 }
 0x27f   :  { %834 = vmatprep.subr.bf16.mxu0 %v2078_v30  ;;  %1670 = vmatprep.subr.bf16.mxu1 %v1993_v0 }
 0x282   :  { %835 = vmatpush1.bf16.msra.mxu0 %v2084_v32  ;;  %1671 = vmatpush3.bf16.msra.mxu1 %v2111_v40 }
 0x283   :  { %836 = vmatprep.subr.bf16.mxu0 %v2087_v33  ;;  %1672 = vmatprep.subr.bf16.mxu1 %v1993_v0 }
 0x286   :  { %837 = vmatpush1.bf16.msra.mxu0 %v2093_v35  ;;  %1673 = vmatpush3.bf16.msra.mxu1 %v2121_v43 }
 0x287   :  { %838 = vmatprep.subr.bf16.mxu0 %v2096_v36  ;;  %1674 = vmatprep.subr.bf16.mxu1 %v1993_v0 }
 0x28a   :  { %839 = vmatpush1.bf16.msra.mxu0 %v2105_v38  ;;  %1675 = vmatpush3.bf16.msra.mxu1 %v2131_v46 }
 0x28b   :  { %840 = vmatprep.subr.bf16.mxu0 %v2108_v39  ;;  %1676 = vmatprep.subr.bf16.mxu1 %v1993_v0 }
 0x28e   :  { %841 = vmatpush1.bf16.msra.mxu0 %v2115_v41  ;;  %1677 = vmatpush3.bf16.msra.mxu1 %v2144_v49 }
 0x28f   :  { %842 = vmatprep.subr.bf16.mxu0 %v2118_v42  ;;  %1678 = vmatprep.subr.bf16.mxu1 %v1993_v0 }
 0x292   :  { %843 = vmatpush1.bf16.msra.mxu0 %v2125_v44  ;;  %1679 = vmatpush3.bf16.msra.mxu1 %v2151_v51 }
 0x293   :  { %844 = vmatprep.subr.bf16.mxu0 %v2128_v45  ;;  %1680 = vmatprep.subr.bf16.mxu1 %v1993_v0 }
 0x296   :  { %845 = vmatpush1.bf16.msra.mxu0 %v2135_v47  ;;  %1681 = vmatpush3.bf16.msra.mxu1 %v2158_v52 }
 0x297   :  { %950 = vmatprep.subr.bf16.mxu0 %v2063_v23  ;;  %1686 = vmatprep.subr.bf16.mxu1 %v1993_v0 }
 0x34c   :  { %v746_v12 = vpop.f32.mrb[12].mxu0  ;;  %v787_v13 = vpop.f32.mrb[12].mxu1 }
 0x34d   :  { %v747_v14 = vadd.f32 %v746_v12, %v2202_v6  ;;  %v748_v15 = vpop.f32.mrb[13].mxu0  ;;  %v1664_v16 = vpop.f32.mrb[13].mxu1  ;;  %v788_v61 = vadd.f32 %v787_v13, %v2214_v53  ;;  %v1421_v13 = vsel %vm1420_vm1, %v2221_v3, %v2267_v48 }
 0x34e   :  { %v749_v18 = vadd.f32 %v748_v15, %v2204_v7  ;;  %v750_v19 = vpop.f32.mrb[14].mxu0  ;;  %v790_v20 = vpop.f32.mrb[14].mxu1 }
 0x34f   :  { %v794_v21 = vrot.slane %v747_v14, 6  ;;  %v751_v22 = vpop.f32.mrb[15].mxu0  ;;  %v1665_v24 = vpop.f32.mrb[15].mxu1  ;;  %v814_v63 = vrot.slane %v788_v61, 6 }
 0x350   :  { %v804_v25 = vrot.slane %v749_v18, 6 }
 0x351   :  { %v796_v28 = vadd.f32 %v794_v21, %v2206_v10 }
 0x352   :  { %v806_v31 = vadd.f32 %v804_v25, %v2211_v17 }
 0x353   :  { %v1493_v50 = vmul.f32 -1.442695, %v796_v28 }
 0x354   :  { %v1494_v55 = vmul.f32 -1.442695, %v806_v31 }
 0x355   :  { %1857 = vpow2.f32 %v1493_v50 }
 0x356   :  { %1859 = vpow2.f32 %v1494_v55 }
 0x35f   :  { %v1858_v56 = vpop.eup %1857 }
 0x360   :  { %v1860_v54 = vpop.eup %1859  ;;  %v800_v58 = vadd.f32 1.0, %v1858_v56 }
 0x361   :  { %v810_v59 = vadd.f32 1.0, %v1860_v54 }
 0x362   :  { %1861 = vrcp.f32 %v800_v58 }
 0x363   :  { %1863 = vrcp.f32 %v810_v59 }
 0x36c   :  { %v1862_v4 = vpop.eup %1861 }
 0x36d   :  { %v1864_v8 = vpop.eup %1863  ;;  %v816_v9 = vmul.f32 %v1862_v4, %v814_v63 }
 0x36e   :  { %v824_v62 = vmul.f32 %v1864_v8, %v822_v5  ;;  %v819_v57 = vsub.f32 1.0, %v1864_v8 }
 0x36f   :  { %v817_v2 = vadd.f32 %v816_v9, %v2217_v60 }
 0x371   :  { %1865 = vtanh.f32 %v817_v2 }
 0x37b   :  { %v1866_v11 = vpop.eup %1865 }
 0x37c   :  { %v820_v12 = vmul.f32 %v1866_v11, %v819_v57 }
 0x37e   :  { %v2313_v14 = vadd.f32 %v824_v62, %v820_v12 }
 0x380   :  { %v826_v15 = vpack.c.bf16 %v2313_v14, %v2313_v14  ;;  %v2320_v16 = vsel %vm1422_vm2, %v1421_v13, %v2313_v14  ;;  %v940_v2 = vrot.slane %v2313_v14, 7 }
 0x382   :  { %v828_v18 = vrot.slane %v826_v15, 1 }
 0x384   :  { %863 = vmatmul.mubr.bf16.vlgmr.msra.gmra.mrb[16].mxu0 %v828_v18  ;;  %1683 = vmatmul.mubr.bf16.vlgmr.msra.gmra.mrb[16].mxu1 %v828_v18 }
 0x385   :  { %951 = vmatpush1.bf16.msra.mxu0 %v2069_v26  ;;  %1687 = vmatpush3.bf16.msra.mxu1 %v2089_v34 }
 0x386   :  { %952 = vmatprep.subr.bf16.mxu0 %v2071_v27  ;;  %1688 = vmatprep.subr.bf16.mxu1 %v1993_v0 }
 0x387   :  { %982 = vmatprep.mubr.bf16.mxu0 %v1994_v1  ;;  %1702 = vmatprep.mubr.msk.bf16.mxu1 %vm1995_vm0, %v1993_v0 }
 0x389   :  { %953 = vmatpush1.bf16.msra.mxu0 %v2075_v29  ;;  %1689 = vmatpush3.bf16.msra.mxu1 %v2099_v37 }
 0x38a   :  { %954 = vmatprep.subr.bf16.mxu0 %v2078_v30  ;;  %1690 = vmatprep.subr.bf16.mxu1 %v1993_v0 }
 0x38d   :  { %955 = vmatpush1.bf16.msra.mxu0 %v2084_v32  ;;  %1691 = vmatpush3.bf16.msra.mxu1 %v2111_v40 }
 0x38e   :  { %956 = vmatprep.subr.bf16.mxu0 %v2087_v33  ;;  %1692 = vmatprep.subr.bf16.mxu1 %v1993_v0 }
 0x391   :  { %957 = vmatpush1.bf16.msra.mxu0 %v2093_v35  ;;  %1693 = vmatpush3.bf16.msra.mxu1 %v2121_v43 }
 0x392   :  { %958 = vmatprep.subr.bf16.mxu0 %v2096_v36  ;;  %1694 = vmatprep.subr.bf16.mxu1 %v1993_v0 }
 0x395   :  { %959 = vmatpush1.bf16.msra.mxu0 %v2105_v38  ;;  %1695 = vmatpush3.bf16.msra.mxu1 %v2131_v46 }
 0x396   :  { %960 = vmatprep.subr.bf16.mxu0 %v2108_v39  ;;  %1696 = vmatprep.subr.bf16.mxu1 %v1993_v0 }
 0x399   :  { %961 = vmatpush1.bf16.msra.mxu0 %v2115_v41  ;;  %1697 = vmatpush3.bf16.msra.mxu1 %v2144_v49 }
 0x39a   :  { %962 = vmatprep.subr.bf16.mxu0 %v2118_v42  ;;  %1698 = vmatprep.subr.bf16.mxu1 %v1993_v0 }
 0x39d   :  { %963 = vmatpush1.bf16.msra.mxu0 %v2125_v44  ;;  %1699 = vmatpush3.bf16.msra.mxu1 %v2151_v51 }
 0x39e   :  { %964 = vmatprep.subr.bf16.mxu0 %v2128_v45  ;;  %1700 = vmatprep.subr.bf16.mxu1 %v1993_v0 }
 0x3a1   :  { %965 = vmatpush1.bf16.msra.mxu0 %v2135_v47  ;;  %1701 = vmatpush3.bf16.msra.mxu1 %v2158_v52 }
 0x3a2   :  { %1068 = vmatprep.subr.bf16.mxu0 %v2063_v23  ;;  %1706 = vmatprep.subr.bf16.mxu1 %v1993_v0 }
 0x457   :  { %v864_v3 = vpop.f32.mrb[16].mxu0  ;;  %v905_v48 = vpop.f32.mrb[16].mxu1 }
 0x458   :  { %v865_v19 = vadd.f32 %v864_v3, %v2202_v6  ;;  %v866_v20 = vpop.f32.mrb[17].mxu0  ;;  %v1684_v21 = vpop.f32.mrb[17].mxu1  ;;  %v906_v8 = vadd.f32 %v905_v48, %v2214_v53 }
 0x459   :  { %v867_v22 = vadd.f32 %v866_v20, %v2204_v7  ;;  %v868_v24 = vpop.f32.mrb[18].mxu0  ;;  %v908_v25 = vpop.f32.mrb[18].mxu1 }
 0x45a   :  { %v912_v28 = vrot.slane %v865_v19, 5  ;;  %v869_v31 = vpop.f32.mrb[19].mxu0  ;;  %v1685_v50 = vpop.f32.mrb[19].mxu1  ;;  %v932_v9 = vrot.slane %v906_v8, 5 }
 0x45b   :  { %v922_v55 = vrot.slane %v867_v22, 5 }
 0x45c   :  { %v914_v56 = vadd.f32 %v912_v28, %v2206_v10 }
 0x45d   :  { %v924_v54 = vadd.f32 %v922_v55, %v2211_v17 }
 0x45e   :  { %v1495_v58 = vmul.f32 -1.442695, %v914_v56 }
 0x45f   :  { %v1496_v59 = vmul.f32 -1.442695, %v924_v54 }
 0x460   :  { %1867 = vpow2.f32 %v1495_v58 }
 0x461   :  { %1869 = vpow2.f32 %v1496_v59 }
 0x46a   :  { %v1868_v61 = vpop.eup %1867 }
 0x46b   :  { %v1870_v63 = vpop.eup %1869  ;;  %v918_v4 = vadd.f32 1.0, %v1868_v61 }
 0x46c   :  { %v928_v5 = vadd.f32 1.0, %v1870_v63 }
 0x46d   :  { %1871 = vrcp.f32 %v918_v4 }
 0x46e   :  { %1873 = vrcp.f32 %v928_v5 }
 0x477   :  { %v1872_v62 = vpop.eup %1871 }
 0x478   :  { %v1874_v57 = vpop.eup %1873  ;;  %v934_v11 = vmul.f32 %v1872_v62, %v932_v9 }
 0x479   :  { %v942_v12 = vmul.f32 %v1874_v57, %v940_v2  ;;  %v937_v15 = vsub.f32 1.0, %v1874_v57 }
 0x47a   :  { %v935_v13 = vadd.f32 %v934_v11, %v2217_v60 }
 0x47c   :  { %1875 = vtanh.f32 %v935_v13 }
 0x486   :  { %v1876_v18 = vpop.eup %1875 }
 0x487   :  { %v938_v3 = vmul.f32 %v1876_v18, %v937_v15 }
 0x489   :  { %v2364_v19 = vadd.f32 %v942_v12, %v938_v3 }
 0x48b   :  { %v944_v20 = vpack.c.bf16 %v2364_v19, %v2364_v19  ;;  %v2370_v48 = vsel %vm1424_vm3, %v2320_v16, %v2364_v19  ;;  %v1060_v12 = vrot.slane %v2364_v19, 7 }
 0x48d   :  { %v946_v14 = vshrl.u32 %v944_v20, 16 }
 0x48f   :  { %v948_v21 = vrot.slane %v946_v14, 1 }
 0x491   :  { %983 = vmatmul.mubr.bf16.vlgmr.msra.gmra.mrb[20].mxu0 %v948_v21  ;;  %1703 = vmatmul.mubr.bf16.vlgmr.msra.gmra.mrb[20].mxu1 %v948_v21 }
 0x492   :  { %1069 = vmatpush1.bf16.msra.mxu0 %v2069_v26  ;;  %1707 = vmatpush3.bf16.msra.mxu1 %v2089_v34 }
 0x493   :  { %1070 = vmatprep.subr.bf16.mxu0 %v2071_v27  ;;  %1708 = vmatprep.subr.bf16.mxu1 %v1993_v0 }
 0x494   :  { %1100 = vmatprep.mubr.bf16.mxu0 %v1994_v1  ;;  %1722 = vmatprep.mubr.msk.bf16.mxu1 %vm1995_vm0, %v1993_v0 }
 0x496   :  { %1071 = vmatpush1.bf16.msra.mxu0 %v2075_v29  ;;  %1709 = vmatpush3.bf16.msra.mxu1 %v2099_v37 }
 0x497   :  { %1072 = vmatprep.subr.bf16.mxu0 %v2078_v30  ;;  %1710 = vmatprep.subr.bf16.mxu1 %v1993_v0 }
 0x49a   :  { %1073 = vmatpush1.bf16.msra.mxu0 %v2084_v32  ;;  %1711 = vmatpush3.bf16.msra.mxu1 %v2111_v40 }
 0x49b   :  { %1074 = vmatprep.subr.bf16.mxu0 %v2087_v33  ;;  %1712 = vmatprep.subr.bf16.mxu1 %v1993_v0 }
 0x49e   :  { %1075 = vmatpush1.bf16.msra.mxu0 %v2093_v35  ;;  %1713 = vmatpush3.bf16.msra.mxu1 %v2121_v43 }
 0x49f   :  { %1076 = vmatprep.subr.bf16.mxu0 %v2096_v36  ;;  %1714 = vmatprep.subr.bf16.mxu1 %v1993_v0 }
 0x4a2   :  { %1077 = vmatpush1.bf16.msra.mxu0 %v2105_v38  ;;  %1715 = vmatpush3.bf16.msra.mxu1 %v2131_v46 }
 0x4a3   :  { %1078 = vmatprep.subr.bf16.mxu0 %v2108_v39  ;;  %1716 = vmatprep.subr.bf16.mxu1 %v1993_v0 }
 0x4a6   :  { %1079 = vmatpush1.bf16.msra.mxu0 %v2115_v41  ;;  %1717 = vmatpush3.bf16.msra.mxu1 %v2144_v49 }
 0x4a7   :  { %1080 = vmatprep.subr.bf16.mxu0 %v2118_v42  ;;  %1718 = vmatprep.subr.bf16.mxu1 %v1993_v0 }
 0x4aa   :  { %1081 = vmatpush1.bf16.msra.mxu0 %v2125_v44  ;;  %1719 = vmatpush3.bf16.msra.mxu1 %v2151_v51 }
 0x4ab   :  { %1082 = vmatprep.subr.bf16.mxu0 %v2128_v45  ;;  %1720 = vmatprep.subr.bf16.mxu1 %v1993_v0 }
 0x4ae   :  { %1083 = vmatpush1.bf16.msra.mxu0 %v2135_v47  ;;  %1721 = vmatpush3.bf16.msra.mxu1 %v2158_v52 }
 0x4af   :  { %1188 = vmatprep.subr.bf16.mxu0 %v2063_v23  ;;  %1726 = vmatprep.subr.bf16.mxu1 %v1993_v0 }
 0x564   :  { %v984_v16 = vpop.f32.mrb[20].mxu0  ;;  %v1025_v22 = vpop.f32.mrb[20].mxu1 }
 0x565   :  { %v985_v24 = vadd.f32 %v984_v16, %v2202_v6  ;;  %v986_v25 = vpop.f32.mrb[21].mxu0  ;;  %v1704_v28 = vpop.f32.mrb[21].mxu1  ;;  %v1026_v2 = vadd.f32 %v1025_v22, %v2214_v53 }
 0x566   :  { %v987_v31 = vadd.f32 %v986_v25, %v2204_v7  ;;  %v988_v50 = vpop.f32.mrb[22].mxu0  ;;  %v1028_v55 = vpop.f32.mrb[22].mxu1 }
 0x567   :  { %v1032_v56 = vrot.slane %v985_v24, 4  ;;  %v989_v54 = vpop.f32.mrb[23].mxu0  ;;  %v1705_v58 = vpop.f32.mrb[23].mxu1  ;;  %v1052_v57 = vrot.slane %v1026_v2, 4  ;;  %v1922_v2 = vld [vmem:[#allocation4 + $0x20] ss:$12 sps:$4 sm:$0xff]  }
 0x568   :  { %v1042_v59 = vrot.slane %v987_v31, 4 }
 0x569   :  { %v1034_v61 = vadd.f32 %v1032_v56, %v2206_v10 }
 0x56a   :  { %v1044_v23 = vadd.f32 %v1042_v59, %v2211_v17 }
 0x56b   :  { %v1497_v63 = vmul.f32 -1.442695, %v1034_v61 }
 0x56c   :  { %v1498_v4 = vmul.f32 -1.442695, %v1044_v23 }
 0x56d   :  { %1877 = vpow2.f32 %v1497_v63 }
 0x56e   :  { %1879 = vpow2.f32 %v1498_v4 }
 0x577   :  { %v1878_v5 = vpop.eup %1877 }
 0x578   :  { %v1880_v8 = vpop.eup %1879  ;;  %v1038_v9 = vadd.f32 1.0, %v1878_v5  ;;  %v1918_v5 = vld [vmem:[#allocation4] ss:$12 sps:$4 sm:$0xff]  }
 0x579   :  { %v1048_v62 = vadd.f32 1.0, %v1880_v8  ;;  %v1919_v8 = vld [vmem:[#allocation4 + $0x8] ss:$12 sps:$4 sm:$0xff]  }
 0x57a   :  { %1881 = vrcp.f32 %v1038_v9  ;;  %v1920_v9 = vld [vmem:[#allocation4 + $0x1c] ss:$12 sps:$4 sm:$0xff]  }
 0x57b   :  { %1883 = vrcp.f32 %v1048_v62  ;;  %v1921_v62 = vld [vmem:[#allocation4 + $0x18] ss:$12 sps:$4 sm:$0xff]  }
 0x584   :  { %v1882_v11 = vpop.eup %1881 }
 0x585   :  { %v1884_v13 = vpop.eup %1883  ;;  %v1054_v15 = vmul.f32 %v1882_v11, %v1052_v57  ;;  %v1923_v57 = vld [vmem:[#allocation4 + $0x34] ss:$12 sps:$4 sm:$0xff]   ;;  %v1924_v11 = vld [vmem:[#allocation4 + $0x30] ss:$12 sps:$4 sm:$0xff]  }
 0x586   :  { %v1062_v18 = vmul.f32 %v1884_v13, %v1060_v12  ;;  %v1057_v20 = vsub.f32 1.0, %v1884_v13  ;;  %v1925_v12 = vld [vmem:[#allocation4 + $0x38] ss:$12 sps:$4 sm:$0xff]  }
 0x587   :  { %v1055_v3 = vadd.f32 %v1054_v15, %v2217_v60  ;;  %v1926_v13 = vld [vmem:[#allocation4 + $0x4c] ss:$12 sps:$4 sm:$0xff]   ;;  %v1928_v15 = vld [vmem:[#allocation4 + $0x50] ss:$12 sps:$4 sm:$0xff]  }
 0x589   :  { %1885 = vtanh.f32 %v1055_v3  ;;  %v1930_v3 = vld [vmem:[#allocation4 + $0x60] ss:$12 sps:$4 sm:$0xff]  }
 0x593   :  { %v1886_v14 = vpop.eup %1885 }
 0x594   :  { %v1058_v21 = vmul.f32 %v1886_v14, %v1057_v20  ;;  %v1931_v20 = vld [vmem:[#allocation4 + $0x68] ss:$12 sps:$4 sm:$0xff]  }
 0x595   :  { %v1932_v14 = vld [vmem:[#allocation4 + $0x7c] ss:$12 sps:$4 sm:$0xff]  }
 0x596   :  { %v2414_v16 = vadd.f32 %v1062_v18, %v1058_v21  ;;  %v1929_v18 = vld [vmem:[#allocation4 + $0x64] ss:$12 sps:$4 sm:$0xff]  }
 0x597   :  { %v1933_v21 = vld [vmem:[#allocation4 + $0x78] ss:$12 sps:$4 sm:$0xff]  }
 0x598   :  { %v1064_v24 = vpack.c.bf16 %v2414_v16, %v2414_v16  ;;  %v2420_v22 = vsel %vm1426_vm4, %v2370_v48, %v2414_v16  ;;  %v1178_v25 = vrot.slane %v2414_v16, 7  ;;  %v1934_v16 = vld [vmem:[#allocation4 + $0x80] ss:$12 sps:$4 sm:$0xff]  }
 0x59a   :  { %v1066_v19 = vrot.slane %v1064_v24, 2  ;;  %v1935_v24 = vld [vmem:[#allocation4 + $0x94] ss:$12 sps:$4 sm:$0xff]  }
 0x59c   :  { %1101 = vmatmul.mubr.bf16.vlgmr.msra.gmra.mrb[24].mxu0 %v1066_v19  ;;  %1723 = vmatmul.mubr.bf16.vlgmr.msra.gmra.mrb[24].mxu1 %v1066_v19  ;;  %v1937_v19 = vld [vmem:[#allocation4 + $0x98] ss:$12 sps:$4 sm:$0xff]  }
 0x59d   :  { %1189 = vmatpush1.bf16.msra.mxu0 %v2069_v26  ;;  %1727 = vmatpush3.bf16.msra.mxu1 %v2089_v34  ;;  %v1917_v26 = vld [vmem:[#allocation4 + $0x4] ss:$12 sps:$4 sm:$0xff]  }
 0x59e   :  { %1190 = vmatprep.subr.bf16.mxu0 %v2071_v27  ;;  %1728 = vmatprep.subr.bf16.mxu1 %v1993_v0 }
 0x59f   :  { %1220 = vmatprep.mubr.bf16.mxu0 %v1994_v1  ;;  %1742 = vmatprep.mubr.msk.bf16.mxu1 %vm1995_vm0, %v1993_v0 }
 0x5a1   :  { %1191 = vmatpush1.bf16.msra.mxu0 %v2075_v29  ;;  %1729 = vmatpush3.bf16.msra.mxu1 %v2099_v37 }
 0x5a2   :  { %1192 = vmatprep.subr.bf16.mxu0 %v2078_v30  ;;  %1730 = vmatprep.subr.bf16.mxu1 %v1993_v0 }
 0x5a5   :  { %1193 = vmatpush1.bf16.msra.mxu0 %v2084_v32  ;;  %1731 = vmatpush3.bf16.msra.mxu1 %v2111_v40 }
 0x5a6   :  { %1194 = vmatprep.subr.bf16.mxu0 %v2087_v33  ;;  %1732 = vmatprep.subr.bf16.mxu1 %v1993_v0 }
 0x5a9   :  { %1195 = vmatpush1.bf16.msra.mxu0 %v2093_v35  ;;  %1733 = vmatpush3.bf16.msra.mxu1 %v2121_v43 }
 0x5aa   :  { %1196 = vmatprep.subr.bf16.mxu0 %v2096_v36  ;;  %1734 = vmatprep.subr.bf16.mxu1 %v1993_v0 }
 0x5ad   :  { %1197 = vmatpush1.bf16.msra.mxu0 %v2105_v38  ;;  %1735 = vmatpush3.bf16.msra.mxu1 %v2131_v46 }
 0x5ae   :  { %1198 = vmatprep.subr.bf16.mxu0 %v2108_v39  ;;  %1736 = vmatprep.subr.bf16.mxu1 %v1993_v0 }
 0x5b1   :  { %1199 = vmatpush1.bf16.msra.mxu0 %v2115_v41  ;;  %1737 = vmatpush3.bf16.msra.mxu1 %v2144_v49 }
 0x5b2   :  { %1200 = vmatprep.subr.bf16.mxu0 %v2118_v42  ;;  %1738 = vmatprep.subr.bf16.mxu1 %v1993_v0 }
 0x5b5   :  { %1201 = vmatpush1.bf16.msra.mxu0 %v2125_v44  ;;  %1739 = vmatpush3.bf16.msra.mxu1 %v2151_v51 }
 0x5b6   :  { %1202 = vmatprep.subr.bf16.mxu0 %v2128_v45  ;;  %1740 = vmatprep.subr.bf16.mxu1 %v1993_v0 }
 0x5b9   :  { %1203 = vmatpush1.bf16.msra.mxu0 %v2135_v47  ;;  %1741 = vmatpush3.bf16.msra.mxu1 %v2158_v52 }
 0x5ba   :  { %1306 = vmatprep.subr.bf16.mxu0 %v1917_v26  ;;  %1746 = vmatprep.subr.bf16.mxu1 %v1993_v0  ;;  %v1938_v26 = vld [vmem:[#allocation4 + $0xac] ss:$12 sps:$4 sm:$0xff]  }
 0x66f   :  { %v1102_v27 = vpop.f32.mrb[24].mxu0  ;;  %v1143_v29 = vpop.f32.mrb[24].mxu1 }
 0x670   :  { %v1103_v30 = vadd.f32 %v1102_v27, %v2202_v6  ;;  %v1104_v32 = vpop.f32.mrb[25].mxu0  ;;  %v1724_v33 = vpop.f32.mrb[25].mxu1  ;;  %v1144_v51 = vadd.f32 %v1143_v29, %v2214_v53  ;;  %v1939_v27 = vld [vmem:[#allocation4 + $0xa8] ss:$12 sps:$4 sm:$0xff]   ;;  %v1940_v29 = vld [vmem:[#allocation4 + $0xb0] ss:$12 sps:$4 sm:$0xff]  }
 0x671   :  { %v1105_v34 = vadd.f32 %v1104_v32, %v2204_v7  ;;  %v1106_v35 = vpop.f32.mrb[26].mxu0  ;;  %v1146_v36 = vpop.f32.mrb[26].mxu1 }
 0x672   :  { %v1150_v37 = vrot.slane %v1103_v30, 3  ;;  %v1107_v38 = vpop.f32.mrb[27].mxu0  ;;  %v1725_v39 = vpop.f32.mrb[27].mxu1  ;;  %v1170_v52 = vrot.slane %v1144_v51, 3 }
 0x673   :  { %v1160_v40 = vrot.slane %v1105_v34, 3 }
 0x674   :  { %v1152_v41 = vadd.f32 %v1150_v37, %v2206_v10 }
 0x675   :  { %v1162_v42 = vadd.f32 %v1160_v40, %v2211_v17 }
 0x676   :  { %v1499_v43 = vmul.f32 -1.442695, %v1152_v41 }
 0x677   :  { %v1500_v44 = vmul.f32 -1.442695, %v1162_v42 }
 0x678   :  { %1887 = vpow2.f32 %v1499_v43 }
 0x679   :  { %1889 = vpow2.f32 %v1500_v44 }
 0x682   :  { %v1888_v45 = vpop.eup %1887 }
 0x683   :  { %v1890_v46 = vpop.eup %1889  ;;  %v1156_v47 = vadd.f32 1.0, %v1888_v45 }
 0x684   :  { %v1166_v49 = vadd.f32 1.0, %v1890_v46 }
 0x685   :  { %1891 = vrcp.f32 %v1156_v47 }
 0x686   :  { %1893 = vrcp.f32 %v1166_v49 }
 0x68f   :  { %v1892_v48 = vpop.eup %1891 }
 0x690   :  { %v1894_v28 = vpop.eup %1893  ;;  %v1172_v31 = vmul.f32 %v1892_v48, %v1170_v52 }
 0x691   :  { %v1180_v50 = vmul.f32 %v1894_v28, %v1178_v25  ;;  %v1175_v56 = vsub.f32 1.0, %v1894_v28 }
 0x692   :  { %v1173_v55 = vadd.f32 %v1172_v31, %v2217_v60 }
 0x694   :  { %1895 = vtanh.f32 %v1173_v55 }
 0x69e   :  { %v1896_v54 = vpop.eup %1895 }
 0x69f   :  { %v1176_v58 = vmul.f32 %v1896_v54, %v1175_v56 }
 0x6a1   :  { %v2463_v59 = vadd.f32 %v1180_v50, %v1176_v58 }
 0x6a3   :  { %v1182_v61 = vpack.c.bf16 %v2463_v59, %v2463_v59  ;;  %v2469_v23 = vsel %vm1428_vm5, %v2420_v22, %v2463_v59  ;;  %v1936_v22 = vld [vmem:[#allocation4 + $0x90] ss:$12 sps:$4 sm:$0xff]   ;;  %v1298_v28 = vrot.slane %v2463_v59, 7 }
 0x6a5   :  { %v1184_v63 = vshrl.u32 %v1182_v61, 16 }
 0x6a7   :  { %v1186_v4 = vrot.slane %v1184_v63, 2 }
 0x6a9   :  { %1221 = vmatmul.mubr.bf16.vlgmr.msra.gmra.mrb[28].mxu0 %v1186_v4  ;;  %1743 = vmatmul.mubr.bf16.vlgmr.msra.gmra.mrb[28].mxu1 %v1186_v4 }
 0x6aa   :  { %1307 = vmatpush1.bf16.msra.mxu0 %v1918_v5  ;;  %1747 = vmatpush3.bf16.msra.mxu1 %v1919_v8 }
 0x6ab   :  { %1308 = vmatprep.subr.bf16.mxu0 %v1920_v9  ;;  %1748 = vmatprep.subr.bf16.mxu1 %v1993_v0 }
 0x6ac   :  { %1338 = vmatprep.mubr.bf16.mxu0 %v1994_v1  ;;  %1762 = vmatprep.mubr.msk.bf16.mxu1 %vm1995_vm0, %v1993_v0  ;;  %v1927_v1 = vld [vmem:[#allocation4 + $0x48] ss:$12 sps:$4 sm:$0xff]  }
 0x6ae   :  { %1309 = vmatpush1.bf16.msra.mxu0 %v1921_v62  ;;  %1749 = vmatpush3.bf16.msra.mxu1 %v1922_v2 }
 0x6af   :  { %1310 = vmatprep.subr.bf16.mxu0 %v1923_v57  ;;  %1750 = vmatprep.subr.bf16.mxu1 %v1993_v0 }
 0x6b2   :  { %1311 = vmatpush1.bf16.msra.mxu0 %v1924_v11  ;;  %1751 = vmatpush3.bf16.msra.mxu1 %v1925_v12 }
 0x6b3   :  { %1312 = vmatprep.subr.bf16.mxu0 %v1926_v13  ;;  %1752 = vmatprep.subr.bf16.mxu1 %v1993_v0 }
 0x6b6   :  { %1313 = vmatpush1.bf16.msra.mxu0 %v1927_v1  ;;  %1753 = vmatpush3.bf16.msra.mxu1 %v1928_v15 }
 0x6b7   :  { %1314 = vmatprep.subr.bf16.mxu0 %v1929_v18  ;;  %1754 = vmatprep.subr.bf16.mxu1 %v1993_v0 }
 0x6ba   :  { %1315 = vmatpush1.bf16.msra.mxu0 %v1930_v3  ;;  %1755 = vmatpush3.bf16.msra.mxu1 %v1931_v20 }
 0x6bb   :  { %1316 = vmatprep.subr.bf16.mxu0 %v1932_v14  ;;  %1756 = vmatprep.subr.bf16.mxu1 %v1993_v0 }
 0x6be   :  { %1317 = vmatpush1.bf16.msra.mxu0 %v1933_v21  ;;  %1757 = vmatpush3.bf16.msra.mxu1 %v1934_v16 }
 0x6bf   :  { %1318 = vmatprep.subr.bf16.mxu0 %v1935_v24  ;;  %1758 = vmatprep.subr.bf16.mxu1 %v1993_v0 }
 0x6c2   :  { %1319 = vmatpush1.bf16.msra.mxu0 %v1936_v22  ;;  %1759 = vmatpush3.bf16.msra.mxu1 %v1937_v19 }
 0x6c3   :  { %1320 = vmatprep.subr.bf16.mxu0 %v1938_v26  ;;  %1760 = vmatprep.subr.bf16.mxu1 %v1993_v0 }
 0x6c6   :  { %1321 = vmatpush1.bf16.msra.mxu0 %v1939_v27  ;;  %1761 = vmatpush3.bf16.msra.mxu1 %v1940_v29 }
 0x77c   :  { %v1222_v30 = vpop.f32.mrb[28].mxu0  ;;  %v1263_v32 = vpop.f32.mrb[28].mxu1 }
 0x77d   :  { %v1223_v33 = vadd.f32 %v1222_v30, %v2202_v6  ;;  %v1224_v34 = vpop.f32.mrb[29].mxu0  ;;  %v1744_v35 = vpop.f32.mrb[29].mxu1  ;;  %v1264_v52 = vadd.f32 %v1263_v32, %v2214_v53 }
 0x77e   :  { %v1225_v36 = vadd.f32 %v1224_v34, %v2204_v7  ;;  %v1226_v37 = vpop.f32.mrb[30].mxu0  ;;  %v1266_v38 = vpop.f32.mrb[30].mxu1 }
 0x77f   :  { %v1270_v39 = vrot.slane %v1223_v33, 2  ;;  %v1227_v40 = vpop.f32.mrb[31].mxu0  ;;  %v1745_v41 = vpop.f32.mrb[31].mxu1  ;;  %v1290_v48 = vrot.slane %v1264_v52, 2 }
 0x780   :  { %v1280_v42 = vrot.slane %v1225_v36, 2 }
 0x781   :  { %v1272_v0 = vadd.f32 %v1270_v39, %v2206_v10 }
 0x782   :  { %v1282_v43 = vadd.f32 %v1280_v42, %v2211_v17 }
 0x783   :  { %v1501_v44 = vmul.f32 -1.442695, %v1272_v0 }
 0x784   :  { %v1502_v45 = vmul.f32 -1.442695, %v1282_v43 }
 0x785   :  { %1897 = vpow2.f32 %v1501_v44 }
 0x786   :  { %1899 = vpow2.f32 %v1502_v45 }
 0x78f   :  { %v1898_v46 = vpop.eup %1897 }
 0x790   :  { %v1900_v47 = vpop.eup %1899  ;;  %v1276_v49 = vadd.f32 1.0, %v1898_v46 }
 0x791   :  { %v1286_v51 = vadd.f32 1.0, %v1900_v47 }
 0x792   :  { %1901 = vrcp.f32 %v1276_v49 }
 0x793   :  { %1903 = vrcp.f32 %v1286_v51 }
 0x79c   :  { %v1902_v25 = vpop.eup %1901 }
 0x79d   :  { %v1904_v31 = vpop.eup %1903  ;;  %v1292_v50 = vmul.f32 %v1902_v25, %v1290_v48 }
 0x79e   :  { %v1300_v55 = vmul.f32 %v1904_v31, %v1298_v28  ;;  %v1295_v54 = vsub.f32 1.0, %v1904_v31 }
 0x79f   :  { %v1293_v56 = vadd.f32 %v1292_v50, %v2217_v60 }
 0x7a1   :  { %1905 = vtanh.f32 %v1293_v56 }
 0x7ab   :  { %v1906_v58 = vpop.eup %1905 }
 0x7ac   :  { %v1296_v61 = vmul.f32 %v1906_v58, %v1295_v54 }
 0x7ae   :  { %v1301_v63 = vadd.f32 %v1300_v55, %v1296_v61 }
 0x7b0   :  { %v1302_v4 = vpack.c.bf16 %v1301_v63, %v1301_v63  ;;  %v1431_v5 = vsel %vm1430_vm6, %v2469_v23, %v1301_v63  ;;  %v1416_v27 = vrot.slane %v1301_v63, 7 }
 0x7b2   :  { %v1304_v8 = vrot.slane %v1302_v4, 3 }
 0x7b4   :  { %1339 = vmatmul.mubr.bf16.vlgmr.msra.gmra.mrb[32].mxu0 %v1304_v8  ;;  %1763 = vmatmul.mubr.bf16.vlgmr.msra.gmra.mrb[32].mxu1 %v1304_v8 }
 0x887   :  { %v1340_v9 = vpop.f32.mrb[32].mxu0  ;;  %v1381_v62 = vpop.f32.mrb[32].mxu1 }
 0x888   :  { %v1341_v59 = vadd.f32 %v1340_v9, %v2202_v6  ;;  %v1342_v2 = vpop.f32.mrb[33].mxu0  ;;  %v1764_v57 = vpop.f32.mrb[33].mxu1 }
 0x889   :  { %v1343_v11 = vadd.f32 %v1342_v2, %v2204_v7  ;;  %v1344_v12 = vpop.f32.mrb[34].mxu0  ;;  %v1384_v13 = vpop.f32.mrb[34].mxu1  ;;  %v1382_v7 = vadd.f32 %v1381_v62, %v2214_v53 }
 0x88a   :  { %v1388_v1 = vrot.slane %v1341_v59, 1  ;;  %v1345_v15 = vpop.f32.mrb[35].mxu0  ;;  %v1765_v18 = vpop.f32.mrb[35].mxu1 }
 0x88b   :  { %v1398_v3 = vrot.slane %v1343_v11, 1  ;;  %v1408_v19 = vrot.slane %v1382_v7, 1 }
 0x88c   :  { %v1390_v20 = vadd.f32 %v1388_v1, %v2206_v10 }
 0x88d   :  { %v1400_v23 = vadd.f32 %v1398_v3, %v2211_v17 }
 0x88e   :  { %v1503_v14 = vmul.f32 -1.442695, %v1390_v20 }
 0x88f   :  { %v1504_v21 = vmul.f32 -1.442695, %v1400_v23 }
 0x890   :  { %1907 = vpow2.f32 %v1503_v14 }
 0x891   :  { %1909 = vpow2.f32 %v1504_v21 }
 0x89a   :  { %v1908_v16 = vpop.eup %1907 }
 0x89b   :  { %v1910_v6 = vpop.eup %1909  ;;  %v1394_v24 = vadd.f32 1.0, %v1908_v16 }
 0x89c   :  { %v1404_v22 = vadd.f32 1.0, %v1910_v6 }
 0x89d   :  { %1911 = vrcp.f32 %v1394_v24 }
 0x89e   :  { %1913 = vrcp.f32 %v1404_v22 }
 0x8a7   :  { %v1912_v26 = vpop.eup %1911 }
 0x8a8   :  { %v1914_v29 = vpop.eup %1913  ;;  %v1410_v30 = vmul.f32 %v1912_v26, %v1408_v19 }
 0x8a9   :  { %v1418_v10 = vmul.f32 %v1914_v29, %v1416_v27  ;;  %v1413_v32 = vsub.f32 1.0, %v1914_v29 }
 0x8aa   :  { %v1411_v17 = vadd.f32 %v1410_v30, %v2217_v60 }
 0x8ac   :  { %1915 = vtanh.f32 %v1411_v17 }
 0x8b6   :  { %v1916_v33 = vpop.eup %1915 }
 0x8b7   :  { %v1414_v34 = vmul.f32 %v1916_v33, %v1413_v32 }
 0x8b9   :  { %v1419_v35 = vadd.f32 %v1418_v10, %v1414_v34 }
 0x8bb   :  { %v1433_v36 = vsel %vm1432_vm7, %v1431_v5, %v1419_v35 }
 0x8bc   :  { %1434 = vst [vmem:[%s2504_s6] sm:$0xff] %v1433_v36 }
 0x8bd   :  { %1439 = vsyncpa [#allocation3], 1 }
 0x8be   :  { %1440 = vsyncpa [#allocation5], 1 }

</bundles_post_ra>
